<compile_context>
chip_gen: v5e
topology: v5e:2x2
jax: 0.10.0
libtpu: 0.0.40
codegen_flags: <defaults>
</compile_context>

<pallas_src>
import jax
import jax.numpy as jnp
from jax.experimental import pallas as pl
from jax.experimental.pallas import tpu as pltpu

# Problem sizes (W is forced to 576 by the Linear layer).
N, CIN, H, W = 1, 3, 8, 576
COUT, KH, KW = 8, 3, 3
NOUT = 10

W_PAD = 640                  # W padded to a multiple of 128 (zero tail lanes)
HP = 16                      # aligned image buffer: rows [0:8] data, [8:16] zero
NP = 128                     # lane-dense output width (>= NOUT, extra cols zero)
KDIM = KH * KW * CIN * H     # 216 = true im2col contraction size
KPAD = 256                   # contraction padded to a multiple of 128


def conv_relu_fc_kernel(x_ref, lhs_ref, b_ref, fcw_ref, out_ref,
                        xpad_ref, p_ref, v2_ref):
    # ---- in-kernel zero padding, sublane-aligned (data starts at row 0) ----
    xpad_ref[...] = jnp.zeros_like(xpad_ref)
    xpad_ref[:, 0:H, 0:W] = x_ref[0]          # rows [8:16) and lanes >= W stay 0

    # zero the padded contraction rows of P once (rows [216:256), aligned)
    p_ref[KDIM:KPAD, :] = jnp.zeros((KPAD - KDIM, W_PAD), jnp.float32)

    # ---- build im2col patch matrix P (KPAD, W_PAD) --------------------------
    # P[tap*CIN*H + cin*H + h, w] = x_padded[cin, h + ky - 1, w + kx - 1]
    # Both the kx (lane) and ky (sublane) offsets use pltpu.roll (XLU), so every
    # read and store below is a full (8,128)-aligned tile copy.  The cyclic
    # wrap lands in the zero lanes (>= W) / zero rows (>= H), giving the conv's
    # zero border for free.  Non-negative shifts are used (639 == -1 mod 640,
    # 15 == -1 mod 16).
    for cin in range(CIN):
        img = xpad_ref[cin]                                    # (16, W_PAD)
        for kx in range(KW):
            if kx == 1:
                lane_sh = img
            else:  # kx=0 -> +1 lane ; kx=2 -> -1 lane
                lane_sh = pltpu.roll(img, shift=(1 - kx) % W_PAD, axis=1)
            for ky in range(KH):
                if ky == 1:
                    sh = lane_sh
                else:  # ky=0 -> +1 sublane ; ky=2 -> -1 sublane
                    sh = pltpu.roll(lane_sh, shift=(1 - ky) % HP, axis=0)
                tap = ky * KW + kx
                base = tap * CIN * H + cin * H                 # multiple of 8
                p_ref[base:base + H, :] = sh[0:H, :]           # aligned copy

    # ---- conv as ONE matmul (64,256)@(256,640), bias(+0.1 folded) + relu ----
    conv = jnp.dot(lhs_ref[...], p_ref[...], preferred_element_type=jnp.float32)
    v2_ref[...] = jnp.maximum(conv + b_ref[...], 0.0)          # staged in VMEM

    # ---- fc as ONE lane-dense matmul (64,640)@(640,128), single vst path ----
    out_ref[...] = jnp.dot(v2_ref[...], fcw_ref[...],
                           preferred_element_type=jnp.float32)


def prepare_params(conv_w, conv_b, fc_w):
    """One-time parameter packing (hoisted out of the per-step forward)."""
    # conv weights -> block-diagonal-in-h im2col LHS, zero-padded to (64, 256):
    #   lhs[co*H + h, tap*CIN*H + cin*H + h'] = conv_w[co, cin, ky, kx] * (h == h')
    w_tap = jnp.transpose(conv_w, (2, 3, 1, 0)).reshape(KH * KW, CIN, COUT)
    eye_h = jnp.eye(H, dtype=jnp.float32)
    lhs_dense = jnp.einsum("tic,hk->chtik", w_tap, eye_h).reshape(COUT * H, KDIM)
    lhs = jnp.zeros((COUT * H, KPAD), jnp.float32).at[:, :KDIM].set(lhs_dense)
    # conv bias with the +0.1 folded in, repeated per fused (co, h) row
    b64 = jnp.repeat(conv_b.astype(jnp.float32) + 0.1, H).reshape(COUT * H, 1)
    # fc weight transposed and zero-padded to (W_PAD, 128): pad lanes (w >= W)
    # and pad output columns (k >= 10) get zero weight (nulls the lane-wrap
    # garbage in conv output lanes >= W).
    fcwp = jnp.zeros((W_PAD, NP), jnp.float32).at[:W, :NOUT].set(fc_w.T)
    return lhs, b64, fcwp


@jax.jit
def model_forward(x, lhs, b64, fcwp):
    out = pl.pallas_call(
        conv_relu_fc_kernel,
        out_shape=jax.ShapeDtypeStruct((COUT * H, NP), jnp.float32),
        in_specs=[pl.BlockSpec(memory_space=pltpu.MemorySpace.VMEM)] * 4,
        out_specs=pl.BlockSpec(memory_space=pltpu.MemorySpace.VMEM),
        scratch_shapes=[
            pltpu.VMEM((CIN, HP, W_PAD), jnp.float32),   # aligned padded image
            pltpu.VMEM((KPAD, W_PAD), jnp.float32),      # im2col patch matrix
            pltpu.VMEM((COUT * H, W_PAD), jnp.float32),  # staged relu result
        ],
    )(x, lhs, b64, fcwp)
    # Lane-dense result (1, COUT, H, 128); columns >= NOUT are exactly zero.
    # The trailing [..., :NOUT] slice is deferred to the consumer.
    return out.reshape(1, COUT, H, NP)


def reference_forward(x, conv_w, conv_b, fc_w):
    v1 = jax.lax.conv_general_dilated(
        x, conv_w, window_strides=(1, 1), padding="SAME",
        dimension_numbers=("NCHW", "OIHW", "NCHW"),
    ) + conv_b.reshape(1, COUT, 1, 1)
    v2 = jnp.maximum(v1 + 0.1, 0.0)
    return jnp.einsum("nchw,kw->nchk", v2, fc_w)


if __name__ == "__main__":
    key = jax.random.PRNGKey(0)
    kx, kw, kb, kf = jax.random.split(key, 4)

    # Deterministic inputs / params (shapes match the PyTorch module).
    x = jax.random.normal(kx, (N, CIN, H, W), dtype=jnp.float32)
    conv_w = jax.random.normal(kw, (COUT, CIN, KH, KW), dtype=jnp.float32) * 0.2
    conv_b = jax.random.normal(kb, (COUT,), dtype=jnp.float32) * 0.1
    fc_w = jax.random.normal(kf, (NOUT, W), dtype=jnp.float32) * 0.05

    lhs, b64, fcwp = jax.block_until_ready(prepare_params(conv_w, conv_b, fc_w))

    out_padded = model_forward(x, lhs, b64, fcwp)
    out_padded = jax.block_until_ready(out_padded)

    # Consumer-side slice to the module's true output shape (1, 8, 8, 10).
    out = out_padded[:, :, :, :NOUT]

    ref = reference_forward(x, conv_w, conv_b, fc_w)
    assert out.shape == (N, COUT, H, NOUT), out.shape
    max_err = float(jnp.max(jnp.abs(out - ref)))
    assert jnp.allclose(out, ref, atol=2e-3, rtol=2e-3), max_err
    # padded columns must be exactly zero (lane-dense output invariant)
    assert float(jnp.max(jnp.abs(out_padded[:, :, :, NOUT:]))) == 0.0

    print("KERNEL_OK")
</pallas_src>

<mosaic_0001>
module attributes {stable_mosaic.version = 11 : i64} {
  func.func @conv_relu_fc_kernel(%arg0: memref<1x3x8x576xf32, #tpu.memory_space<vmem>>, %arg1: memref<64x256xf32, #tpu.memory_space<vmem>>, %arg2: memref<64x1xf32, #tpu.memory_space<vmem>>, %arg3: memref<640x128xf32, #tpu.memory_space<vmem>>, %arg4: memref<64x128xf32, #tpu.memory_space<vmem>>, %arg5: memref<3x16x640xf32, #tpu.memory_space<vmem>>, %arg6: memref<256x640xf32, #tpu.memory_space<vmem>>, %arg7: memref<64x640xf32, #tpu.memory_space<vmem>>) attributes {dimension_semantics = [], scalar_prefetch = 0 : i64, scratch_operands = 3 : i64, tpu.core_type = #tpu.core_type<tc>} {
    %cst = arith.constant 0.000000e+00 : f32
    %0 = vector.broadcast %cst : f32 to vector<3x16x640xf32>
    %c0 = arith.constant 0 : index
    %c0_0 = arith.constant 0 : index
    %c0_1 = arith.constant 0 : index
    %1 = vector.load %arg5[%c0, %c0_0, %c0_1] : memref<3x16x640xf32, #tpu.memory_space<vmem>>, vector<3x16x640xf32>
    tpu.vector_store %arg5[%c0, %c0_0, %c0_1], %0 {strides = array<i32>} : memref<3x16x640xf32, #tpu.memory_space<vmem>>, vector<3x16x640xf32>,
    %c0_2 = arith.constant 0 : index
    %c0_3 = arith.constant 0 : index
    %c0_4 = arith.constant 0 : index
    %c0_5 = arith.constant 0 : index
    %2 = vector.load %arg0[%c0_2, %c0_3, %c0_4, %c0_5] : memref<1x3x8x576xf32, #tpu.memory_space<vmem>>, vector<1x3x8x576xf32>
    %3 = vector.shape_cast %2 : vector<1x3x8x576xf32> to vector<3x8x576xf32>
    %c0_6 = arith.constant 0 : index
    %c0_7 = arith.constant 0 : index
    %c0_8 = arith.constant 0 : index
    %4 = vector.load %arg5[%c0_6, %c0_7, %c0_8] : memref<3x16x640xf32, #tpu.memory_space<vmem>>, vector<3x8x576xf32>
    tpu.vector_store %arg5[%c0_6, %c0_7, %c0_8], %3 {strides = array<i32>} : memref<3x16x640xf32, #tpu.memory_space<vmem>>, vector<3x8x576xf32>,
    %cst_9 = arith.constant 0.000000e+00 : f32
    %5 = vector.broadcast %cst_9 : f32 to vector<40x640xf32>
    %c216 = arith.constant 216 : index
    %c0_10 = arith.constant 0 : index
    %6 = vector.load %arg6[%c216, %c0_10] : memref<256x640xf32, #tpu.memory_space<vmem>>, vector<40x640xf32>
    tpu.vector_store %arg6[%c216, %c0_10], %5 {strides = array<i32>} : memref<256x640xf32, #tpu.memory_space<vmem>>, vector<40x640xf32>,
    %c0_11 = arith.constant 0 : index
    %c0_12 = arith.constant 0 : index
    %c0_13 = arith.constant 0 : index
    %7 = vector.load %arg5[%c0_11, %c0_12, %c0_13] : memref<3x16x640xf32, #tpu.memory_space<vmem>>, vector<1x16x640xf32>
    %8 = vector.shape_cast %7 : vector<1x16x640xf32> to vector<16x640xf32>
    %c1_i32 = arith.constant 1 : i32
    %9 = tpu.dynamic_rotate %8 by %c1_i32 dim 1 : vector<16x640xf32>, i32 -> vector<16x640xf32>
    %c1_i32_14 = arith.constant 1 : i32
    %10 = tpu.dynamic_rotate %9 by %c1_i32_14 dim 0 : vector<16x640xf32>, i32 -> vector<16x640xf32>
    %11 = vector.extract_strided_slice %10 {offsets = [0, 0], sizes = [8, 640], strides = [1, 1]} : vector<16x640xf32> to vector<8x640xf32>
    %c0_15 = arith.constant 0 : index
    %c0_16 = arith.constant 0 : index
    %12 = vector.load %arg6[%c0_15, %c0_16] : memref<256x640xf32, #tpu.memory_space<vmem>>, vector<8x640xf32>
    tpu.vector_store %arg6[%c0_15, %c0_16], %11 {strides = array<i32>} : memref<256x640xf32, #tpu.memory_space<vmem>>, vector<8x640xf32>,
    %13 = vector.extract_strided_slice %9 {offsets = [0, 0], sizes = [8, 640], strides = [1, 1]} : vector<16x640xf32> to vector<8x640xf32>
    %c72 = arith.constant 72 : index
    %c0_17 = arith.constant 0 : index
    %14 = vector.load %arg6[%c72, %c0_17] : memref<256x640xf32, #tpu.memory_space<vmem>>, vector<8x640xf32>
    tpu.vector_store %arg6[%c72, %c0_17], %13 {strides = array<i32>} : memref<256x640xf32, #tpu.memory_space<vmem>>, vector<8x640xf32>,
    %c15_i32 = arith.constant 15 : i32
    %15 = tpu.dynamic_rotate %9 by %c15_i32 dim 0 : vector<16x640xf32>, i32 -> vector<16x640xf32>
    %16 = vector.extract_strided_slice %15 {offsets = [0, 0], sizes = [8, 640], strides = [1, 1]} : vector<16x640xf32> to vector<8x640xf32>
    %c144 = arith.constant 144 : index
    %c0_18 = arith.constant 0 : index
    %17 = vector.load %arg6[%c144, %c0_18] : memref<256x640xf32, #tpu.memory_space<vmem>>, vector<8x640xf32>
    tpu.vector_store %arg6[%c144, %c0_18], %16 {strides = array<i32>} : memref<256x640xf32, #tpu.memory_space<vmem>>, vector<8x640xf32>,
    %c1_i32_19 = arith.constant 1 : i32
    %18 = tpu.dynamic_rotate %8 by %c1_i32_19 dim 0 : vector<16x640xf32>, i32 -> vector<16x640xf32>
    %19 = vector.extract_strided_slice %18 {offsets = [0, 0], sizes = [8, 640], strides = [1, 1]} : vector<16x640xf32> to vector<8x640xf32>
    %c24 = arith.constant 24 : index
    %c0_20 = arith.constant 0 : index
    %20 = vector.load %arg6[%c24, %c0_20] : memref<256x640xf32, #tpu.memory_space<vmem>>, vector<8x640xf32>
    tpu.vector_store %arg6[%c24, %c0_20], %19 {strides = array<i32>} : memref<256x640xf32, #tpu.memory_space<vmem>>, vector<8x640xf32>,
    %21 = vector.extract_strided_slice %8 {offsets = [0, 0], sizes = [8, 640], strides = [1, 1]} : vector<16x640xf32> to vector<8x640xf32>
    %c96 = arith.constant 96 : index
    %c0_21 = arith.constant 0 : index
    %22 = vector.load %arg6[%c96, %c0_21] : memref<256x640xf32, #tpu.memory_space<vmem>>, vector<8x640xf32>
    tpu.vector_store %arg6[%c96, %c0_21], %21 {strides = array<i32>} : memref<256x640xf32, #tpu.memory_space<vmem>>, vector<8x640xf32>,
    %c15_i32_22 = arith.constant 15 : i32
    %23 = tpu.dynamic_rotate %8 by %c15_i32_22 dim 0 : vector<16x640xf32>, i32 -> vector<16x640xf32>
    %24 = vector.extract_strided_slice %23 {offsets = [0, 0], sizes = [8, 640], strides = [1, 1]} : vector<16x640xf32> to vector<8x640xf32>
    %c168 = arith.constant 168 : index
    %c0_23 = arith.constant 0 : index
    %25 = vector.load %arg6[%c168, %c0_23] : memref<256x640xf32, #tpu.memory_space<vmem>>, vector<8x640xf32>
    tpu.vector_store %arg6[%c168, %c0_23], %24 {strides = array<i32>} : memref<256x640xf32, #tpu.memory_space<vmem>>, vector<8x640xf32>,
    %c639_i32 = arith.constant 639 : i32
    %26 = tpu.dynamic_rotate %8 by %c639_i32 dim 1 : vector<16x640xf32>, i32 -> vector<16x640xf32>
    %c1_i32_24 = arith.constant 1 : i32
    %27 = tpu.dynamic_rotate %26 by %c1_i32_24 dim 0 : vector<16x640xf32>, i32 -> vector<16x640xf32>
    %28 = vector.extract_strided_slice %27 {offsets = [0, 0], sizes = [8, 640], strides = [1, 1]} : vector<16x640xf32> to vector<8x640xf32>
    %c48 = arith.constant 48 : index
    %c0_25 = arith.constant 0 : index
    %29 = vector.load %arg6[%c48, %c0_25] : memref<256x640xf32, #tpu.memory_space<vmem>>, vector<8x640xf32>
    tpu.vector_store %arg6[%c48, %c0_25], %28 {strides = array<i32>} : memref<256x640xf32, #tpu.memory_space<vmem>>, vector<8x640xf32>,
    %30 = vector.extract_strided_slice %26 {offsets = [0, 0], sizes = [8, 640], strides = [1, 1]} : vector<16x640xf32> to vector<8x640xf32>
    %c120 = arith.constant 120 : index
    %c0_26 = arith.constant 0 : index
    %31 = vector.load %arg6[%c120, %c0_26] : memref<256x640xf32, #tpu.memory_space<vmem>>, vector<8x640xf32>
    tpu.vector_store %arg6[%c120, %c0_26], %30 {strides = array<i32>} : memref<256x640xf32, #tpu.memory_space<vmem>>, vector<8x640xf32>,
    %c15_i32_27 = arith.constant 15 : i32
    %32 = tpu.dynamic_rotate %26 by %c15_i32_27 dim 0 : vector<16x640xf32>, i32 -> vector<16x640xf32>
    %33 = vector.extract_strided_slice %32 {offsets = [0, 0], sizes = [8, 640], strides = [1, 1]} : vector<16x640xf32> to vector<8x640xf32>
    %c192 = arith.constant 192 : index
    %c0_28 = arith.constant 0 : index
    %34 = vector.load %arg6[%c192, %c0_28] : memref<256x640xf32, #tpu.memory_space<vmem>>, vector<8x640xf32>
    tpu.vector_store %arg6[%c192, %c0_28], %33 {strides = array<i32>} : memref<256x640xf32, #tpu.memory_space<vmem>>, vector<8x640xf32>,
    %c1 = arith.constant 1 : index
    %c0_29 = arith.constant 0 : index
    %c0_30 = arith.constant 0 : index
    %35 = vector.load %arg5[%c1, %c0_29, %c0_30] : memref<3x16x640xf32, #tpu.memory_space<vmem>>, vector<1x16x640xf32>
    %36 = vector.shape_cast %35 : vector<1x16x640xf32> to vector<16x640xf32>
    %c1_i32_31 = arith.constant 1 : i32
    %37 = tpu.dynamic_rotate %36 by %c1_i32_31 dim 1 : vector<16x640xf32>, i32 -> vector<16x640xf32>
    %c1_i32_32 = arith.constant 1 : i32
    %38 = tpu.dynamic_rotate %37 by %c1_i32_32 dim 0 : vector<16x640xf32>, i32 -> vector<16x640xf32>
    %39 = vector.extract_strided_slice %38 {offsets = [0, 0], sizes = [8, 640], strides = [1, 1]} : vector<16x640xf32> to vector<8x640xf32>
    %c8 = arith.constant 8 : index
    %c0_33 = arith.constant 0 : index
    %40 = vector.load %arg6[%c8, %c0_33] : memref<256x640xf32, #tpu.memory_space<vmem>>, vector<8x640xf32>
    tpu.vector_store %arg6[%c8, %c0_33], %39 {strides = array<i32>} : memref<256x640xf32, #tpu.memory_space<vmem>>, vector<8x640xf32>,
    %41 = vector.extract_strided_slice %37 {offsets = [0, 0], sizes = [8, 640], strides = [1, 1]} : vector<16x640xf32> to vector<8x640xf32>
    %c80 = arith.constant 80 : index
    %c0_34 = arith.constant 0 : index
    %42 = vector.load %arg6[%c80, %c0_34] : memref<256x640xf32, #tpu.memory_space<vmem>>, vector<8x640xf32>
    tpu.vector_store %arg6[%c80, %c0_34], %41 {strides = array<i32>} : memref<256x640xf32, #tpu.memory_space<vmem>>, vector<8x640xf32>,
    %c15_i32_35 = arith.constant 15 : i32
    %43 = tpu.dynamic_rotate %37 by %c15_i32_35 dim 0 : vector<16x640xf32>, i32 -> vector<16x640xf32>
    %44 = vector.extract_strided_slice %43 {offsets = [0, 0], sizes = [8, 640], strides = [1, 1]} : vector<16x640xf32> to vector<8x640xf32>
    %c152 = arith.constant 152 : index
    %c0_36 = arith.constant 0 : index
    %45 = vector.load %arg6[%c152, %c0_36] : memref<256x640xf32, #tpu.memory_space<vmem>>, vector<8x640xf32>
    tpu.vector_store %arg6[%c152, %c0_36], %44 {strides = array<i32>} : memref<256x640xf32, #tpu.memory_space<vmem>>, vector<8x640xf32>,
    %c1_i32_37 = arith.constant 1 : i32
    %46 = tpu.dynamic_rotate %36 by %c1_i32_37 dim 0 : vector<16x640xf32>, i32 -> vector<16x640xf32>
    %47 = vector.extract_strided_slice %46 {offsets = [0, 0], sizes = [8, 640], strides = [1, 1]} : vector<16x640xf32> to vector<8x640xf32>
    %c32 = arith.constant 32 : index
    %c0_38 = arith.constant 0 : index
    %48 = vector.load %arg6[%c32, %c0_38] : memref<256x640xf32, #tpu.memory_space<vmem>>, vector<8x640xf32>
    tpu.vector_store %arg6[%c32, %c0_38], %47 {strides = array<i32>} : memref<256x640xf32, #tpu.memory_space<vmem>>, vector<8x640xf32>,
    %49 = vector.extract_strided_slice %36 {offsets = [0, 0], sizes = [8, 640], strides = [1, 1]} : vector<16x640xf32> to vector<8x640xf32>
    %c104 = arith.constant 104 : index
    %c0_39 = arith.constant 0 : index
    %50 = vector.load %arg6[%c104, %c0_39] : memref<256x640xf32, #tpu.memory_space<vmem>>, vector<8x640xf32>
    tpu.vector_store %arg6[%c104, %c0_39], %49 {strides = array<i32>} : memref<256x640xf32, #tpu.memory_space<vmem>>, vector<8x640xf32>,
    %c15_i32_40 = arith.constant 15 : i32
    %51 = tpu.dynamic_rotate %36 by %c15_i32_40 dim 0 : vector<16x640xf32>, i32 -> vector<16x640xf32>
    %52 = vector.extract_strided_slice %51 {offsets = [0, 0], sizes = [8, 640], strides = [1, 1]} : vector<16x640xf32> to vector<8x640xf32>
    %c176 = arith.constant 176 : index
    %c0_41 = arith.constant 0 : index
    %53 = vector.load %arg6[%c176, %c0_41] : memref<256x640xf32, #tpu.memory_space<vmem>>, vector<8x640xf32>
    tpu.vector_store %arg6[%c176, %c0_41], %52 {strides = array<i32>} : memref<256x640xf32, #tpu.memory_space<vmem>>, vector<8x640xf32>,
    %c639_i32_42 = arith.constant 639 : i32
    %54 = tpu.dynamic_rotate %36 by %c639_i32_42 dim 1 : vector<16x640xf32>, i32 -> vector<16x640xf32>
    %c1_i32_43 = arith.constant 1 : i32
    %55 = tpu.dynamic_rotate %54 by %c1_i32_43 dim 0 : vector<16x640xf32>, i32 -> vector<16x640xf32>
    %56 = vector.extract_strided_slice %55 {offsets = [0, 0], sizes = [8, 640], strides = [1, 1]} : vector<16x640xf32> to vector<8x640xf32>
    %c56 = arith.constant 56 : index
    %c0_44 = arith.constant 0 : index
    %57 = vector.load %arg6[%c56, %c0_44] : memref<256x640xf32, #tpu.memory_space<vmem>>, vector<8x640xf32>
    tpu.vector_store %arg6[%c56, %c0_44], %56 {strides = array<i32>} : memref<256x640xf32, #tpu.memory_space<vmem>>, vector<8x640xf32>,
    %58 = vector.extract_strided_slice %54 {offsets = [0, 0], sizes = [8, 640], strides = [1, 1]} : vector<16x640xf32> to vector<8x640xf32>
    %c128 = arith.constant 128 : index
    %c0_45 = arith.constant 0 : index
    %59 = vector.load %arg6[%c128, %c0_45] : memref<256x640xf32, #tpu.memory_space<vmem>>, vector<8x640xf32>
    tpu.vector_store %arg6[%c128, %c0_45], %58 {strides = array<i32>} : memref<256x640xf32, #tpu.memory_space<vmem>>, vector<8x640xf32>,
    %c15_i32_46 = arith.constant 15 : i32
    %60 = tpu.dynamic_rotate %54 by %c15_i32_46 dim 0 : vector<16x640xf32>, i32 -> vector<16x640xf32>
    %61 = vector.extract_strided_slice %60 {offsets = [0, 0], sizes = [8, 640], strides = [1, 1]} : vector<16x640xf32> to vector<8x640xf32>
    %c200 = arith.constant 200 : index
    %c0_47 = arith.constant 0 : index
    %62 = vector.load %arg6[%c200, %c0_47] : memref<256x640xf32, #tpu.memory_space<vmem>>, vector<8x640xf32>
    tpu.vector_store %arg6[%c200, %c0_47], %61 {strides = array<i32>} : memref<256x640xf32, #tpu.memory_space<vmem>>, vector<8x640xf32>,
    %c2 = arith.constant 2 : index
    %c0_48 = arith.constant 0 : index
    %c0_49 = arith.constant 0 : index
    %63 = vector.load %arg5[%c2, %c0_48, %c0_49] : memref<3x16x640xf32, #tpu.memory_space<vmem>>, vector<1x16x640xf32>
    %64 = vector.shape_cast %63 : vector<1x16x640xf32> to vector<16x640xf32>
    %c1_i32_50 = arith.constant 1 : i32
    %65 = tpu.dynamic_rotate %64 by %c1_i32_50 dim 1 : vector<16x640xf32>, i32 -> vector<16x640xf32>
    %c1_i32_51 = arith.constant 1 : i32
    %66 = tpu.dynamic_rotate %65 by %c1_i32_51 dim 0 : vector<16x640xf32>, i32 -> vector<16x640xf32>
    %67 = vector.extract_strided_slice %66 {offsets = [0, 0], sizes = [8, 640], strides = [1, 1]} : vector<16x640xf32> to vector<8x640xf32>
    %c16 = arith.constant 16 : index
    %c0_52 = arith.constant 0 : index
    %68 = vector.load %arg6[%c16, %c0_52] : memref<256x640xf32, #tpu.memory_space<vmem>>, vector<8x640xf32>
    tpu.vector_store %arg6[%c16, %c0_52], %67 {strides = array<i32>} : memref<256x640xf32, #tpu.memory_space<vmem>>, vector<8x640xf32>,
    %69 = vector.extract_strided_slice %65 {offsets = [0, 0], sizes = [8, 640], strides = [1, 1]} : vector<16x640xf32> to vector<8x640xf32>
    %c88 = arith.constant 88 : index
    %c0_53 = arith.constant 0 : index
    %70 = vector.load %arg6[%c88, %c0_53] : memref<256x640xf32, #tpu.memory_space<vmem>>, vector<8x640xf32>
    tpu.vector_store %arg6[%c88, %c0_53], %69 {strides = array<i32>} : memref<256x640xf32, #tpu.memory_space<vmem>>, vector<8x640xf32>,
    %c15_i32_54 = arith.constant 15 : i32
    %71 = tpu.dynamic_rotate %65 by %c15_i32_54 dim 0 : vector<16x640xf32>, i32 -> vector<16x640xf32>
    %72 = vector.extract_strided_slice %71 {offsets = [0, 0], sizes = [8, 640], strides = [1, 1]} : vector<16x640xf32> to vector<8x640xf32>
    %c160 = arith.constant 160 : index
    %c0_55 = arith.constant 0 : index
    %73 = vector.load %arg6[%c160, %c0_55] : memref<256x640xf32, #tpu.memory_space<vmem>>, vector<8x640xf32>
    tpu.vector_store %arg6[%c160, %c0_55], %72 {strides = array<i32>} : memref<256x640xf32, #tpu.memory_space<vmem>>, vector<8x640xf32>,
    %c1_i32_56 = arith.constant 1 : i32
    %74 = tpu.dynamic_rotate %64 by %c1_i32_56 dim 0 : vector<16x640xf32>, i32 -> vector<16x640xf32>
    %75 = vector.extract_strided_slice %74 {offsets = [0, 0], sizes = [8, 640], strides = [1, 1]} : vector<16x640xf32> to vector<8x640xf32>
    %c40 = arith.constant 40 : index
    %c0_57 = arith.constant 0 : index
    %76 = vector.load %arg6[%c40, %c0_57] : memref<256x640xf32, #tpu.memory_space<vmem>>, vector<8x640xf32>
    tpu.vector_store %arg6[%c40, %c0_57], %75 {strides = array<i32>} : memref<256x640xf32, #tpu.memory_space<vmem>>, vector<8x640xf32>,
    %77 = vector.extract_strided_slice %64 {offsets = [0, 0], sizes = [8, 640], strides = [1, 1]} : vector<16x640xf32> to vector<8x640xf32>
    %c112 = arith.constant 112 : index
    %c0_58 = arith.constant 0 : index
    %78 = vector.load %arg6[%c112, %c0_58] : memref<256x640xf32, #tpu.memory_space<vmem>>, vector<8x640xf32>
    tpu.vector_store %arg6[%c112, %c0_58], %77 {strides = array<i32>} : memref<256x640xf32, #tpu.memory_space<vmem>>, vector<8x640xf32>,
    %c15_i32_59 = arith.constant 15 : i32
    %79 = tpu.dynamic_rotate %64 by %c15_i32_59 dim 0 : vector<16x640xf32>, i32 -> vector<16x640xf32>
    %80 = vector.extract_strided_slice %79 {offsets = [0, 0], sizes = [8, 640], strides = [1, 1]} : vector<16x640xf32> to vector<8x640xf32>
    %c184 = arith.constant 184 : index
    %c0_60 = arith.constant 0 : index
    %81 = vector.load %arg6[%c184, %c0_60] : memref<256x640xf32, #tpu.memory_space<vmem>>, vector<8x640xf32>
    tpu.vector_store %arg6[%c184, %c0_60], %80 {strides = array<i32>} : memref<256x640xf32, #tpu.memory_space<vmem>>, vector<8x640xf32>,
    %c639_i32_61 = arith.constant 639 : i32
    %82 = tpu.dynamic_rotate %64 by %c639_i32_61 dim 1 : vector<16x640xf32>, i32 -> vector<16x640xf32>
    %c1_i32_62 = arith.constant 1 : i32
    %83 = tpu.dynamic_rotate %82 by %c1_i32_62 dim 0 : vector<16x640xf32>, i32 -> vector<16x640xf32>
    %84 = vector.extract_strided_slice %83 {offsets = [0, 0], sizes = [8, 640], strides = [1, 1]} : vector<16x640xf32> to vector<8x640xf32>
    %c64 = arith.constant 64 : index
    %c0_63 = arith.constant 0 : index
    %85 = vector.load %arg6[%c64, %c0_63] : memref<256x640xf32, #tpu.memory_space<vmem>>, vector<8x640xf32>
    tpu.vector_store %arg6[%c64, %c0_63], %84 {strides = array<i32>} : memref<256x640xf32, #tpu.memory_space<vmem>>, vector<8x640xf32>,
    %86 = vector.extract_strided_slice %82 {offsets = [0, 0], sizes = [8, 640], strides = [1, 1]} : vector<16x640xf32> to vector<8x640xf32>
    %c136 = arith.constant 136 : index
    %c0_64 = arith.constant 0 : index
    %87 = vector.load %arg6[%c136, %c0_64] : memref<256x640xf32, #tpu.memory_space<vmem>>, vector<8x640xf32>
    tpu.vector_store %arg6[%c136, %c0_64], %86 {strides = array<i32>} : memref<256x640xf32, #tpu.memory_space<vmem>>, vector<8x640xf32>,
    %c15_i32_65 = arith.constant 15 : i32
    %88 = tpu.dynamic_rotate %82 by %c15_i32_65 dim 0 : vector<16x640xf32>, i32 -> vector<16x640xf32>
    %89 = vector.extract_strided_slice %88 {offsets = [0, 0], sizes = [8, 640], strides = [1, 1]} : vector<16x640xf32> to vector<8x640xf32>
    %c208 = arith.constant 208 : index
    %c0_66 = arith.constant 0 : index
    %90 = vector.load %arg6[%c208, %c0_66] : memref<256x640xf32, #tpu.memory_space<vmem>>, vector<8x640xf32>
    tpu.vector_store %arg6[%c208, %c0_66], %89 {strides = array<i32>} : memref<256x640xf32, #tpu.memory_space<vmem>>, vector<8x640xf32>,
    %c0_67 = arith.constant 0 : index
    %c0_68 = arith.constant 0 : index
    %91 = vector.load %arg1[%c0_67, %c0_68] : memref<64x256xf32, #tpu.memory_space<vmem>>, vector<64x256xf32>
    %c0_69 = arith.constant 0 : index
    %c0_70 = arith.constant 0 : index
    %92 = vector.load %arg6[%c0_69, %c0_70] : memref<256x640xf32, #tpu.memory_space<vmem>>, vector<256x640xf32>
    %cst_71 = arith.constant dense<0.000000e+00> : vector<64x640xf32>
    %93 = tpu.matmul %91, %92, %cst_71 {dimension_numbers = #tpu.dot_dimension_numbers<[1], [0], [0], [1], [0, 0, 1, 1], [], []>} : vector<64x256xf32>, vector<256x640xf32>, vector<64x640xf32> -> vector<64x640xf32>
    %c0_72 = arith.constant 0 : index
    %c0_73 = arith.constant 0 : index
    %94 = vector.load %arg2[%c0_72, %c0_73] : memref<64x1xf32, #tpu.memory_space<vmem>>, vector<64x1xf32>
    %95 = vector.broadcast %94 : vector<64x1xf32> to vector<64x640xf32>
    %96 = arith.addf %93, %95 : vector<64x640xf32>
    %cst_74 = arith.constant 0.000000e+00 : f32
    %97 = vector.broadcast %cst_74 : f32 to vector<64x640xf32>
    %98 = arith.maximumf %96, %97 : vector<64x640xf32>
    %c0_75 = arith.constant 0 : index
    %c0_76 = arith.constant 0 : index
    %99 = vector.load %arg7[%c0_75, %c0_76] : memref<64x640xf32, #tpu.memory_space<vmem>>, vector<64x640xf32>
    tpu.vector_store %arg7[%c0_75, %c0_76], %98 {strides = array<i32>} : memref<64x640xf32, #tpu.memory_space<vmem>>, vector<64x640xf32>,
    %c0_77 = arith.constant 0 : index
    %c0_78 = arith.constant 0 : index
    %100 = vector.load %arg7[%c0_77, %c0_78] : memref<64x640xf32, #tpu.memory_space<vmem>>, vector<64x640xf32>
    %c0_79 = arith.constant 0 : index
    %c0_80 = arith.constant 0 : index
    %101 = vector.load %arg3[%c0_79, %c0_80] : memref<640x128xf32, #tpu.memory_space<vmem>>, vector<640x128xf32>
    %cst_81 = arith.constant dense<0.000000e+00> : vector<64x128xf32>
    %102 = tpu.matmul %100, %101, %cst_81 {dimension_numbers = #tpu.dot_dimension_numbers<[1], [0], [0], [1], [0, 0, 1, 1], [], []>} : vector<64x640xf32>, vector<640x128xf32>, vector<64x128xf32> -> vector<64x128xf32>
    %c0_82 = arith.constant 0 : index
    %c0_83 = arith.constant 0 : index
    %103 = vector.load %arg4[%c0_82, %c0_83] : memref<64x128xf32, #tpu.memory_space<vmem>>, vector<64x128xf32>
    tpu.vector_store %arg4[%c0_82, %c0_83], %102 {strides = array<i32>} : memref<64x128xf32, #tpu.memory_space<vmem>>, vector<64x128xf32>,
    return
  }
}

</mosaic_0001>

<bundles_post_ra>
// kernel: model_forward.1
= control target key start
LH: loop header
LB: loop body
LE: loop exit
PB: predicated region body
PF: predicated region fallthrough
CT: control target
= control target key end

     0   :  { %9 = vsyncpa [#allocation6], 0  ;;  %s3484_s0 = inlined_call_operand.hbm [shape: f32[1,3,8,576], index: 0, kind: input, shape index: {}]   ;;  %s3485_s1 = inlined_call_operand.hbm [shape: f32[64,256], index: 1, kind: input, shape index: {}]   ;;  %s3486_s2 = inlined_call_operand.vmem [shape: f32[64,1], index: 2, kind: input, shape index: {}]   ;;  %s3487_s3 = inlined_call_operand.hbm [shape: f32[640,128], index: 3, kind: input, shape index: {}]   ;;  %s3488_s4 = inlined_call_operand.hbm [shape: f32[64,128], index: 4, kind: output, shape index: {}]  }
   0x1   :  { %10 = vsyncpa [#allocation9], 0  ;;  %s29_s17 = sshll.u32 %s3485_s1, 4  ;;  %s30_s17 = int_to_ptr.hbm [resolvable:$true] %s29_s17 }
   0x2   :  { %11 = vsyncpa [#allocation7], 0  ;;  %s2138_s18 = smov [#allocation8]   ;;  %s16_s22 = sshll.u32 %s3484_s0, 4  ;;  %s17_s22 = int_to_ptr.hbm [resolvable:$true] %s16_s22 }
   0x3   :  { %s31_s19 = sshll.u32 %s2138_s18, 4  ;;  %s2139_s23 = smov 256   ;;  %s32_s19 = int_to_ptr.vmem [resolvable:$true] %s31_s19 }
   0x4   :  { %s2140_s24 = smov 16   ;;  %s2141_s25 = smov [#allocation5]  }
   0x5   :  { %37 = dma.hbm_to_vmem [thread:$0]  %s30_s17, 2048, %s32_s19, [#allocation9], %s2139_s23, %s2139_s23, %s2140_s24  }
   0x6   :  { %s18_s26 = sshll.u32 %s2141_s25, 4  ;;  %s2142_s27 = smov 640   ;;  %s19_s26 = int_to_ptr.vmem [resolvable:$true] %s18_s26 }
   0x7   :  { %s2143_s28 = smov 40   ;;  %s44_s30 = sshll.u32 %s3487_s3, 4  ;;  %s45_s30 = int_to_ptr.hbm [resolvable:$true] %s44_s30 }
   0x8   :  { %24 = dma.hbm_to_vmem [thread:$0]  %s17_s22, 1920, %s19_s26, [#allocation6], %s2142_s27, %s2142_s27, %s2143_s28  }
   0x9   :  { %s2144_s5 = smov [#allocation10]   ;;  %s2145_s7 = smov 128  }
   0xa   :  { %s46_s6 = sshll.u32 %s2144_s5, 4  ;;  %s2146_s0 = smov 8   ;;  %s47_s6 = int_to_ptr.vmem [resolvable:$true] %s46_s6 }
   0xb   :  { %52 = dma.hbm_to_vmem [thread:$0]  %s45_s30, 10240, %s47_s6, [#allocation9], %s2145_s7, %s2145_s7, %s2146_s0  }
   0xc   :  { %2132 = dma.done.wait [#allocation6], 1920  }
   0xd   :  { %2133 = vsyncadd [#allocation6], 4294965376 }
   0xe   :  { %2134 = dma.done.wait [#allocation9], 12288  }
   0xf   :  { %2135 = vsyncadd [#allocation9], 4294955008  ;;  %v3507_v0 = vmov 0.0   ;;  %v2190_v1 = vld [vmem:[#allocation5 + $0x58] sm:$0xff]  ;;  %v2192_v2 = vld [vmem:[#allocation5 + $0x30] sm:$0xff]  ;;  %s2148_s3 = smov 127   ;;  %v181_v39 = vlaneseq }
  0x10   :  { %69 = vst [vmem:[#allocation2 + $0x20] sm:$0xff] %v3507_v0  ;;  %v2194_v3 = vld [vmem:[#allocation5 + $0x8] sm:$0xff]  ;;  %v1873_v4 = vpack.i.bf16 0.0, %v2190_v1  ;;  %v1883_v5 = vpack.i.bf16 0.0, %v2192_v2  ;;  %v2204_v7 = vld [vmem:[#allocation5 + $0x60] sm:$0xff]  ;;  %v2206_v8 = vld [vmem:[#allocation5 + $0x38] sm:$0xff] }
  0x11   :  { %122 = vst [vmem:[#allocation2 + $0xa8] sm:$0xff] %v2190_v1  ;;  %v1893_v6 = vpack.i.bf16 0.0, %v2194_v3  ;;  %v2208_v9 = vld [vmem:[#allocation5 + $0x10] sm:$0xff]  ;;  %v1878_v10 = vpack.i.bf16 0.0, %v2204_v7  ;;  %v1888_v11 = vpack.i.bf16 0.0, %v2206_v8  ;;  %v2219_v14 = vld [vmem:[#allocation5 + $0x28] sm:$0xff]  ;;  %v1978_v33 = vpack.i.bf16 %v2206_v8, %v2204_v7 }
  0x12   :  { %79 = vst [vmem:[#allocation2 + $0x70] sm:$0xff] %v3507_v0  ;;  %1874 = vrot.lane.b32.xlu0 %v1873_v4, %s2148_s3  ;;  %1884 = vrot.lane.b32.xlu1 %v1883_v5, %s2148_s3  ;;  %v1898_v12 = vpack.i.bf16 0.0, %v2208_v9  ;;  %v2217_v13 = vld [vmem:[#allocation5 + $0x50] sm:$0xff]  ;;  %v2222_v15 = vld [vmem:[#allocation5] sm:$0xff]  ;;  %v1908_v17 = vpack.i.bf16 0.0, %v2219_v14  ;;  %vm114_vm0 = vcmask 523264  }
  0x13   :  { %1894 = vrot.lane.b32.xlu2 %v1893_v6, %s2148_s3  ;;  %89 = vst [vmem:[#allocation2 + $0xc0] sm:$0xff] %v3507_v0  ;;  %v1903_v16 = vpack.i.bf16 0.0, %v2217_v13  ;;  %v1913_v18 = vpack.i.bf16 0.0, %v2222_v15  ;;  %v109_v19 = vld [vmem:[#allocation5 + $0x70] sm:$0xff]  ;;  %v104_v20 = vld [vmem:[#allocation5 + $0x48] sm:$0xff]  ;;  %v99_v21 = vld [vmem:[#allocation5 + $0x20] sm:$0xff] }
  0x14   :  { %117 = vst [vmem:[#allocation2 + $0x58] sm:$0xff] %v2192_v2  ;;  %v2231_v22 = vld [vmem:[#allocation5 + $0x18] sm:$0xff]  ;;  %v2233_v23 = vld [vmem:[#allocation5 + $0x68] sm:$0xff]  ;;  %v2237_v24 = vld [vmem:[#allocation5 + $0x40] sm:$0xff]  ;;  %s2149_s8 = smov 1   ;;  %v2291_v41 = vand.u32 127, %v181_v39 }
  0x15   :  { %111 = vst [vmem:[#allocation2 + $0x8] sm:$0xff] %v2194_v3  ;;  %v1963_v31 = vpack.i.bf16 %v2233_v23, %v2231_v22  ;;  %v1968_v32 = vpack.i.bf16 %v2237_v24, %v3507_v0  ;;  %v2008_v36 = vpack.i.bf16 %v2237_v24, %v2233_v23  ;;  %v2013_v37 = vpack.i.bf16 0.0, %v2231_v22  ;;  %s1829_s28 = sshll.u32 %s3488_s4, 4  ;;  %s1830_s28 = int_to_ptr.hbm [resolvable:$true] %s1829_s28 }
  0x16   :  { %125 = vst.msk [vmem:[#allocation2 + $0xc0] sm:$0xff] %vm114_vm0, %v109_v19  ;;  %vm308_vm1 = vcmp.lt.s32.totalorder %v2291_v41, 127  ;;  %v2317_v51 = vshrl.u32 %v181_v39, 7  ;;  %vm183_vm4 = vcmp.lt.s32.totalorder %v2291_v41, 1 }
  0x17   :  { %120 = vst.msk [vmem:[#allocation2 + $0x70] sm:$0xff] %vm114_vm0, %v104_v20 }
  0x18   :  { %115 = vst.msk [vmem:[#allocation2 + $0x20] sm:$0xff] %vm114_vm0, %v99_v21  ;;  %vm206_vm2 = vcmp.lt.s32.totalorder %v2317_v51, 1  ;;  %vm232_vm3 = vcmp.lt.s32.totalorder %v2317_v51, 7 }
  0x19   :  { %113 = vst [vmem:[#allocation2 + $0x18] sm:$0xff] %v2231_v22 }
  0x1a   :  { %1879 = vrot.lane.b32.xlu0 %v1878_v10, %s2148_s3  ;;  %1889 = vrot.lane.b32.xlu1 %v1888_v11, %s2148_s3  ;;  %124 = vst [vmem:[#allocation2 + $0xb8] sm:$0xff] %v2233_v23 }
  0x1b   :  { %1899 = vrot.lane.b32.xlu2 %v1898_v12, %s2148_s3  ;;  %119 = vst [vmem:[#allocation2 + $0x68] sm:$0xff] %v2237_v24 }
  0x1d   :  { %v2246_v25 = vld [vmem:[#allocation2 + $0xc0] sm:$0xff] }
  0x1e   :  { %v2248_v26 = vld [vmem:[#allocation2 + $0x70] sm:$0xff]  ;;  %v1948_v28 = vpack.i.bf16 0.0, %v2246_v25 }
  0x1f   :  { %v2250_v27 = vld [vmem:[#allocation2 + $0x20] sm:$0xff]  ;;  %v1953_v29 = vpack.i.bf16 0.0, %v2248_v26  ;;  %v1998_v35 = vpack.i.bf16 %v2248_v26, %v3507_v0 }
  0x20   :  { %3539 = vst [vmem:[#allocation15_spill] sm:$0xff] %v2250_v27  ;;  %v1958_v30 = vpack.i.bf16 0.0, %v2250_v27  ;;  %v1993_v34 = vpack.i.bf16 %v2246_v25, %v2250_v27 }
  0x22   :  { %1904 = vrot.lane.b32.xlu0 %v1903_v16, %s2148_s3  ;;  %1909 = vrot.lane.b32.xlu1 %v1908_v17, %s2148_s3 }
  0x23   :  { %1914 = vrot.lane.b32.xlu2 %v1913_v18, %s2148_s3 }
  0x2a   :  { %1919 = vrot.lane.b32.xlu0 %v1903_v16, %s2149_s8  ;;  %1924 = vrot.lane.b32.xlu1 %v1873_v4, %s2149_s8 }
  0x2b   :  { %1929 = vrot.lane.b32.xlu2 %v1908_v17, %s2149_s8 }
  0x32   :  { %1934 = vrot.lane.b32.xlu0 %v1883_v5, %s2149_s8  ;;  %1939 = vrot.lane.b32.xlu1 %v1913_v18, %s2149_s8 }
  0x33   :  { %1944 = vrot.lane.b32.xlu2 %v1893_v6, %s2149_s8  ;;  %v682_v6 = vrot.slane %v2190_v1, 1 }
  0x3a   :  { %1949 = vrot.lane.b32.xlu0 %v1948_v28, %s2149_s8  ;;  %1954 = vrot.lane.b32.xlu1 %v1953_v29, %s2149_s8  ;;  %v2375_v28 = vrot.slane %v3507_v0, 1  ;;  %v476_v29 = vrot.slane %v2192_v2, 1 }
  0x3b   :  { %1959 = vrot.lane.b32.xlu2 %v1958_v30, %s2149_s8 }
  0x42   :  { %1964 = vrot.lane.b32.xlu0 %v1963_v31, %s2148_s3  ;;  %1969 = vrot.lane.b32.xlu1 %v1968_v32, %s2148_s3 }
  0x43   :  { %1974 = vrot.lane.b32.xlu2 %v3507_v0, %s2148_s3 }
  0x4a   :  { %1979 = vrot.lane.b32.xlu0 %v1978_v33, %s2149_s8  ;;  %1984 = vrot.lane.b32.xlu1 %v1898_v12, %s2149_s8 }
  0x4b   :  { %1989 = vrot.lane.b32.xlu2 %v3507_v0, %s2149_s8 }
  0x52   :  { %1994 = vrot.lane.b32.xlu0 %v1993_v34, %s2148_s3  ;;  %1999 = vrot.lane.b32.xlu1 %v1998_v35, %s2148_s3 }
  0x53   :  { %2004 = vrot.lane.b32.xlu2 %v3507_v0, %s2148_s3 }
  0x5a   :  { %2009 = vrot.lane.b32.xlu0 %v2008_v36, %s2149_s8  ;;  %2014 = vrot.lane.b32.xlu1 %v2013_v37, %s2149_s8 }
  0x5b   :  { %2019 = vrot.lane.b32.xlu2 %v3507_v0, %s2149_s8 }
  0x6d   :  { %v2287_v38 = vpop.permute.xlu2 %1894 }
  0x6e   :  { %v1896_v42 = vunpack.i.l.bf16 %v2287_v38  ;;  %v1897_v48 = vunpack.i.h.bf16 %v2287_v38 }
  0x75   :  { %v2289_v40 = vpop.permute.xlu2 %1899 }
  0x76   :  { %v3497_v49 = vunpack.i.h.bf16 %v2289_v40  ;;  %v3498_v50 = vunpack.i.l.bf16 %v2289_v40 }
  0x78   :  { %v2325_v52 = vsel %vm308_vm1, %v1896_v42, %v3498_v50  ;;  %v2332_v53 = vsel %vm308_vm1, %v1897_v48, %v3497_v49 }
  0x79   :  { %v345_v4 = vrot.slane %v2325_v52, 1  ;;  %v350_v5 = vrot.slane %v2332_v53, 1 }
  0x7d   :  { %v2295_v43 = vpop.permute.xlu2 %1914 }
  0x7e   :  { %v3489_v44 = vunpack.i.l.bf16 %v2295_v43  ;;  %v3491_v32 = vunpack.i.h.bf16 %v2295_v43 }
  0x80   :  { %v2302_v45 = vsel %vm308_vm1, %v3489_v44, %v1896_v42  ;;  %v355_v42 = vsel %vm232_vm3, %v345_v4, %v350_v5  ;;  %v2410_v4 = vsel %vm308_vm1, %v3491_v32, %v1897_v48  ;;  %v486_v5 = vsel %vm232_vm3, %v476_v29, %v2375_v28 }
  0x81   :  { %1000 = vmatpush.msra.mxu0 %v2302_v45  ;;  %1843 = vmatpush.msra.mxu2 %v2302_v45 }
  0x83   :  { %1001 = vmatpush.msra.mxu0 %v2217_v13  ;;  %1844 = vmatpush.msra.mxu2 %v2217_v13 }
  0x84   :  { %v2308_v46 = vpop.permute.xlu0 %1874  ;;  %v2310_v47 = vpop.permute.xlu1 %1884 }
  0x85   :  { %1002 = vmatpush.msra.mxu0 %v2219_v14  ;;  %1845 = vmatpush.msra.mxu2 %v2219_v14  ;;  %v1877_v54 = vunpack.i.h.bf16 %v2308_v46  ;;  %v1876_v55 = vunpack.i.l.bf16 %v2308_v46  ;;  %v1887_v56 = vunpack.i.h.bf16 %v2310_v47  ;;  %v1886_v57 = vunpack.i.l.bf16 %v2310_v47  ;;  %v2372_v21 = vpop.permute.xlu2 %1929 }
  0x87   :  { %1003 = vmatpush.msra.mxu0 %v2222_v15  ;;  %1846 = vmatpush.msra.mxu2 %v2222_v15 }
  0x8c   :  { %v2338_v58 = vpop.permute.xlu0 %1879  ;;  %v2340_v59 = vpop.permute.xlu1 %1889 }
  0x8d   :  { %v3501_v60 = vunpack.i.h.bf16 %v2338_v58  ;;  %v3505_v61 = vunpack.i.l.bf16 %v2338_v58  ;;  %v3506_v62 = vunpack.i.h.bf16 %v2340_v59  ;;  %v3503_v63 = vunpack.i.l.bf16 %v2340_v59 }
  0x8f   :  { %v2354_v10 = vsel %vm308_vm1, %v1876_v55, %v3505_v61  ;;  %v2360_v11 = vsel %vm308_vm1, %v1886_v57, %v3503_v63  ;;  %v726_v12 = vsel %vm308_vm1, %v1877_v54, %v3501_v60  ;;  %v520_v16 = vsel %vm308_vm1, %v1887_v56, %v3506_v62 }
  0x90   :  { %v757_v17 = vrot.slane %v2354_v10, 1  ;;  %v762_v18 = vrot.slane %v726_v12, 1  ;;  %v551_v19 = vrot.slane %v2360_v11, 1  ;;  %v556_v20 = vrot.slane %v520_v16, 1 }
  0x91   :  { %v732_v30 = vrot.slane %v2354_v10, 7  ;;  %v737_v31 = vrot.slane %v726_v12, 7  ;;  %v526_v34 = vrot.slane %v2360_v11, 7  ;;  %v531_v35 = vrot.slane %v520_v16, 7 }
  0x92   :  { %v767_v33 = vsel %vm232_vm3, %v757_v17, %v762_v18  ;;  %v561_v39 = vsel %vm232_vm3, %v551_v19, %v556_v20  ;;  %v692_v18 = vsel %vm232_vm3, %v682_v6, %v2375_v28  ;;  %v269_v19 = vrot.slane %v2194_v3, 1 }
  0x93   :  { %1128 = vmatpush.msra.mxu3 %v767_v33  ;;  %v2385_v36 = vsel %vm206_vm2, %v737_v31, %v732_v30  ;;  %v2397_v46 = vsel %vm206_vm2, %v531_v35, %v526_v34  ;;  %v344_v33 = vrot.slane %v2302_v45, 1  ;;  %v349_v34 = vrot.slane %v2410_v4, 1 }
  0x94   :  { %v2387_v37 = vpop.permute.xlu0 %1904  ;;  %v2389_v38 = vpop.permute.xlu1 %1909  ;;  %3540 = vst [vmem:[#allocation16_spill] sm:$0xff] %v2397_v46  ;;  %v681_v35 = vrot.slane %v2217_v13, 1 }
  0x95   :  { %v3493_v47 = vunpack.i.h.bf16 %v2387_v37  ;;  %v3494_v12 = vunpack.i.l.bf16 %v2387_v37  ;;  %v3492_v16 = vunpack.i.h.bf16 %v2389_v38  ;;  %v3490_v17 = vunpack.i.l.bf16 %v2389_v38  ;;  %1129 = vmatpush.msra.mxu3 %v561_v39  ;;  %v2452_v39 = vpop.permute.xlu2 %1944 }
  0x96   :  { %v691_v32 = vsel %vm232_vm3, %v681_v35, %v2375_v28 }
  0x97   :  { %v2420_v20 = vsel %vm308_vm1, %v3494_v12, %v1876_v55  ;;  %v2426_v6 = vsel %vm308_vm1, %v3490_v17, %v1886_v57  ;;  %1130 = vmatpush.msra.mxu3 %v355_v42  ;;  %v2432_v48 = vsel %vm308_vm1, %v3493_v47, %v1877_v54  ;;  %v2438_v29 = vsel %vm308_vm1, %v3492_v16, %v1887_v56 }
  0x98   :  { %v756_v55 = vrot.slane %v2420_v20, 1  ;;  %v761_v30 = vrot.slane %v2432_v48, 1  ;;  %v550_v57 = vrot.slane %v2426_v6, 1  ;;  %v555_v31 = vrot.slane %v2438_v29, 1 }
  0x99   :  { %1131 = vmatpush.msra.mxu3 %v692_v18  ;;  %v279_v56 = vsel %vm232_vm3, %v269_v19, %v2375_v28  ;;  %v3499_v16 = vunpack.i.l.bf16 %v2452_v39 }
  0x9a   :  { %v766_v54 = vsel %vm232_vm3, %v756_v55, %v761_v30  ;;  %v560_v55 = vsel %vm232_vm3, %v550_v57, %v555_v31  ;;  %v475_v30 = vrot.slane %v2219_v14, 1  ;;  %v268_v57 = vrot.slane %v2222_v15, 1 }
  0x9b   :  { %1046 = vmatpush.msra.mxu1 %v766_v54  ;;  %1132 = vmatpush.msra.mxu3 %v486_v5  ;;  %v354_v5 = vsel %vm232_vm3, %v344_v33, %v349_v34 }
  0x9c   :  { %v2454_v42 = vpop.permute.xlu0 %1919  ;;  %v2457_v18 = vpop.permute.xlu1 %1924  ;;  %v485_v35 = vsel %vm232_vm3, %v475_v30, %v2375_v28 }
  0x9d   :  { %v1922_v44 = vunpack.i.h.bf16 %v2454_v42  ;;  %v1921_v19 = vunpack.i.l.bf16 %v2454_v42  ;;  %v3495_v17 = vunpack.i.h.bf16 %v2457_v18  ;;  %v3496_v54 = vunpack.i.l.bf16 %v2457_v18  ;;  %1047 = vmatpush.msra.mxu1 %v560_v55  ;;  %1133 = vmatpush.msra.mxu3 %v279_v56 }
  0x9e   :  { %v278_v55 = vsel %vm232_vm3, %v268_v57, %v2375_v28 }
  0x9f   :  { %v2476_v31 = vsel %vm183_vm4, %v1921_v19, %v3496_v54  ;;  %1048 = vmatpush.msra.mxu1 %v354_v5  ;;  %v608_v56 = vsel %vm183_vm4, %v1922_v44, %v3495_v17  ;;  %v3504_v5 = vunpack.i.h.bf16 %v2452_v39  ;;  %v1932_v17 = vunpack.i.h.bf16 %v2372_v21 }
  0xa0   :  { %v637_v33 = vrot.slane %v2476_v31, 1  ;;  %v642_v34 = vrot.slane %v608_v56, 1  ;;  %v612_v47 = vrot.slane %v2476_v31, 7  ;;  %v617_v12 = vrot.slane %v608_v56, 7 }
  0xa1   :  { %1049 = vmatpush.msra.mxu1 %v691_v32  ;;  %v1931_v32 = vunpack.i.l.bf16 %v2372_v21 }
  0xa2   :  { %v647_v42 = vsel %vm232_vm3, %v637_v33, %v642_v34  ;;  %v2498_v34 = vpop.permute.xlu2 %1959 }
  0xa3   :  { %1134 = vmatpush.msra.mxu3 %v647_v42  ;;  %1050 = vmatpush.msra.mxu1 %v485_v35  ;;  %3541 = vst [vmem:[#allocation17_spill] sm:$0xff] %v2498_v34  ;;  %v2504_v35 = vsel %vm206_vm2, %v617_v12, %v612_v47  ;;  %v3508_v60 = vunpack.i.l.bf16 %v2498_v34 }
  0xa4   :  { %v2496_v30 = vpop.permute.xlu0 %1934  ;;  %v1940_v33 = vpop.permute.xlu1 %1939  ;;  %3542 = vst [vmem:[#allocation18_spill] sm:$0xff] %v2504_v35 }
  0xa5   :  { %v3502_v57 = vunpack.i.h.bf16 %v2496_v30  ;;  %v3500_v54 = vunpack.i.l.bf16 %v2496_v30  ;;  %v1942_v49 = vunpack.i.h.bf16 %v1940_v33  ;;  %v1941_v50 = vunpack.i.l.bf16 %v1940_v33  ;;  %1051 = vmatpush.msra.mxu1 %v278_v55 }
  0xa7   :  { %v2510_v21 = vsel %vm183_vm4, %v1931_v32, %v3500_v54  ;;  %v2516_v56 = vsel %vm183_vm4, %v1941_v50, %v3499_v16  ;;  %v2522_v42 = vsel %vm183_vm4, %v1932_v17, %v3502_v57  ;;  %v2528_v47 = vsel %vm183_vm4, %v1942_v49, %v3504_v5 }
  0xa8   :  { %v431_v12 = vrot.slane %v2510_v21, 1  ;;  %v436_v55 = vrot.slane %v2522_v42, 1  ;;  %v223_v33 = vrot.slane %v2516_v56, 1  ;;  %v228_v16 = vrot.slane %v2528_v47, 1 }
  0xaa   :  { %v441_v57 = vsel %vm232_vm3, %v431_v12, %v436_v55  ;;  %v234_v63 = vsel %vm232_vm3, %v223_v33, %v228_v16  ;;  %v2552_v12 = vsel %vm183_vm4, %v3508_v60, %v1941_v50  ;;  %v3545_v16 = vunpack.i.h.bf16 %v2498_v34  ;;  %v2560_v55 = vpop.permute.xlu2 %1974 }
  0xab   :  { %1135 = vmatpush.msra.mxu3 %v441_v57  ;;  %v731_v33 = vrot.slane %v2420_v20, 7  ;;  %v319_v34 = vrot.slane %v2302_v45, 7 }
  0xac   :  { %v2540_v5 = vpop.permute.xlu0 %1949  ;;  %v2542_v61 = vpop.permute.xlu1 %1954  ;;  %v2558_v57 = vsel %vm183_vm4, %v3545_v16, %v1942_v49  ;;  %v736_v16 = vrot.slane %v2432_v48, 7 }
  0xad   :  { %3543 = vst [vmem:[#allocation19_spill] sm:$0xff] %v2540_v5  ;;  %v3511_v62 = vunpack.i.h.bf16 %v2540_v5  ;;  %v3512_v0 = vunpack.i.l.bf16 %v2540_v5  ;;  %v3509_v35 = vunpack.i.h.bf16 %v2542_v61  ;;  %v3510_v54 = vunpack.i.l.bf16 %v2542_v61  ;;  %1136 = vmatpush.msra.mxu3 %v234_v63 }
  0xae   :  { %3544 = vst [vmem:[#allocation20_spill] sm:$0xff] %v2542_v61  ;;  %v741_v45 = vsel %vm206_vm2, %v736_v16, %v731_v33  ;;  %v3548_v16 = vunpack.i.l.bf16 %v2560_v55 }
  0xaf   :  { %1137 = vmatpush.msra.mxu3 %v2354_v10  ;;  %v2567_v63 = vsel %vm183_vm4, %v3512_v0, %v1921_v19  ;;  %v2573_v50 = vsel %vm183_vm4, %v3510_v54, %v1931_v32  ;;  %v2579_v49 = vsel %vm183_vm4, %v3511_v62, %v1922_v44  ;;  %v2585_v10 = vsel %vm183_vm4, %v3509_v35, %v1932_v17  ;;  %v2593_v44 = vld [vmem:[#allocation8 + $0x8] sm:$0xff] }
  0xb0   :  { %1004 = vmatpush.msra.mxu0 %v2567_v63  ;;  %1847 = vmatpush.msra.mxu2 %v2567_v63  ;;  %v636_v19 = vrot.slane %v2567_v63, 1  ;;  %v641_v32 = vrot.slane %v2579_v49, 1  ;;  %3546 = vst [vmem:[#allocation21_spill] sm:$0xff] %v2593_v44  ;;  %v430_v60 = vrot.slane %v2573_v50, 1  ;;  %v435_v17 = vrot.slane %v2585_v10, 1 }
  0xb1   :  { %1138 = vmatpush.msra.mxu3 %v2360_v11  ;;  %v525_v35 = vrot.slane %v2426_v6, 7  ;;  %v530_v54 = vrot.slane %v2438_v29, 7  ;;  %v222_v0 = vrot.slane %v2552_v12, 1  ;;  %v227_v11 = vrot.slane %v2558_v57, 1 }
  0xb2   :  { %1005 = vmatpush.msra.mxu0 %v2573_v50  ;;  %1848 = vmatpush.msra.mxu2 %v2573_v50  ;;  %v646_v48 = vsel %vm232_vm3, %v636_v19, %v641_v32  ;;  %v324_v29 = vrot.slane %v2410_v4, 7  ;;  %v656_v62 = vrot.slane %v2217_v13, 7  ;;  %v440_v19 = vsel %vm232_vm3, %v430_v60, %v435_v17 }
  0xb3   :  { %1052 = vmatpush.msra.mxu1 %v646_v48  ;;  %1139 = vmatmul.f32.vlgmr.msra.gmra.mxu3 %v2593_v44  ;;  %v3547_v32 = vmov 0.0   ;;  %v233_v60 = vsel %vm232_vm3, %v222_v0, %v227_v11  ;;  %v535_v33 = vsel %vm206_vm2, %v530_v54, %v525_v35  ;;  %v3549_v17 = vunpack.i.h.bf16 %v2340_v59 }
  0xb4   :  { %v2612_v46 = vpop.permute.xlu0 %1964  ;;  %v2614_v5 = vpop.permute.xlu1 %1969  ;;  %1006 = vmatpush.msra.mxu0 %v2552_v12  ;;  %1849 = vmatpush.msra.mxu2 %v2552_v12  ;;  %v2623_v4 = vrot.slane %v3547_v32, 7  ;;  %v450_v48 = vrot.slane %v2219_v14, 7  ;;  %v3551_v54 = vunpack.i.l.bf16 %v2340_v59  ;;  %v3552_v14 = vunpack.i.h.bf16 %v2338_v58 }
  0xb5   :  { %v3528_v13 = vunpack.i.h.bf16 %v2612_v46  ;;  %v3520_v61 = vunpack.i.h.bf16 %v2614_v5  ;;  %v3521_v27 = vunpack.i.l.bf16 %v2614_v5  ;;  %1053 = vmatpush.msra.mxu1 %v440_v19  ;;  %v2639_v32 = vsel %vm308_vm1, %v3549_v17, %v3548_v16 }
  0xb6   :  { %1007 = vmatpush.msra.mxu0 %v741_v45  ;;  %1850 = vmatpush.msra.mxu2 %v741_v45  ;;  %v3550_v19 = vunpack.i.l.bf16 %v2338_v58  ;;  %v3553_v45 = vunpack.i.l.bf16 %v2612_v46  ;;  %v3554_v16 = vunpack.i.l.bf16 %v2289_v40 }
  0xb7   :  { %v2656_v35 = vsel %vm308_vm1, %v3551_v54, %v3520_v61  ;;  %1054 = vmatpush.msra.mxu1 %v233_v60  ;;  %v2664_v11 = vsel %vm308_vm1, %v3552_v14, %v3521_v27  ;;  %v329_v60 = vsel %vm206_vm2, %v324_v29, %v319_v34  ;;  %v3555_v14 = vunpack.i.h.bf16 %v2560_v55 }
  0xb8   :  { %v2648_v0 = vsel %vm308_vm1, %v3550_v19, %v3528_v13  ;;  %v2672_v59 = vsel %vm308_vm1, %v3554_v16, %v3553_v45  ;;  %1008 = vmatpush.msra.mxu0 %v535_v33  ;;  %1851 = vmatpush.msra.mxu2 %v535_v33  ;;  %v763_v58 = vrot.slane %v2664_v11, 1  ;;  %v666_v19 = vsel %vm206_vm2, %v2623_v4, %v656_v62 }
  0xb9   :  { %v758_v17 = vrot.slane %v2648_v0, 1  ;;  %1055 = vmatpush.msra.mxu1 %v2420_v20  ;;  %v552_v54 = vrot.slane %v2656_v35, 1  ;;  %v3556_v45 = vunpack.i.h.bf16 %v2289_v40  ;;  %v243_v34 = vrot.slane %v2222_v15, 7 }
  0xba   :  { %1009 = vmatpush.msra.mxu0 %v329_v60  ;;  %1852 = vmatpush.msra.mxu2 %v329_v60  ;;  %v346_v29 = vrot.slane %v2672_v59, 1  ;;  %v557_v62 = vrot.slane %v2639_v32, 1  ;;  %v460_v40 = vsel %vm206_vm2, %v2623_v4, %v450_v48  ;;  %v683_v16 = vrot.slane %v2204_v7, 1 }
  0xbb   :  { %v2689_v33 = vsel %vm308_vm1, %v3556_v45, %v3555_v14  ;;  %v768_v20 = vsel %vm232_vm3, %v758_v17, %v763_v58  ;;  %1056 = vmatpush.msra.mxu1 %v2426_v6  ;;  %v253_v6 = vsel %vm206_vm2, %v2623_v4, %v243_v34  ;;  %v611_v48 = vrot.slane %v2567_v63, 7  ;;  %v2714_v45 = vpop.permute.xlu2 %1989 }
  0xbc   :  { %1210 = vmatpush.msrb.mxu3 %v768_v20  ;;  %v2701_v14 = vpop.permute.xlu0 %1979  ;;  %v2703_v15 = vpop.permute.xlu1 %1984  ;;  %1010 = vmatpush.msra.mxu0 %v666_v19  ;;  %v562_v60 = vsel %vm232_vm3, %v552_v54, %v557_v62  ;;  %v351_v17 = vrot.slane %v2689_v33, 1  ;;  %v477_v58 = vrot.slane %v2206_v8, 1  ;;  %v2721_v62 = vld [vmem:[#allocation8 + $0x18] sm:$0xff]  ;;  %v616_v34 = vrot.slane %v2579_v49, 7 }
  0xbd   :  { %1853 = vmatpush.msra.mxu2 %v666_v19  ;;  %1057 = vmatmul.f32.vlgmr.msra.gmra.mxu1 %v2593_v44  ;;  %v3524_v19 = vunpack.i.l.bf16 %v2701_v14  ;;  %v3522_v20 = vunpack.i.h.bf16 %v2703_v15  ;;  %3557 = vst [vmem:[#allocation22_spill] sm:$0xff] %v2721_v62  ;;  %v693_v63 = vsel %vm232_vm3, %v683_v16, %v2375_v28  ;;  %v405_v61 = vrot.slane %v2573_v50, 7 }
  0xbe   :  { %1211 = vmatpush.msrb.mxu3 %v562_v60  ;;  %1164 = vmatpush.msrb.mxu1 %v2672_v59  ;;  %v356_v54 = vsel %vm232_vm3, %v346_v29, %v351_v17  ;;  %v270_v60 = vrot.slane %v2208_v9, 1  ;;  %v410_v27 = vrot.slane %v2585_v10, 7  ;;  %v3523_v29 = vunpack.i.h.bf16 %v2701_v14 }
  0xbf   :  { %1011 = vmatpush.msra.mxu0 %v460_v40  ;;  %1854 = vmatpush.msra.mxu2 %v460_v40  ;;  %v487_v49 = vsel %vm232_vm3, %v477_v58, %v2375_v28  ;;  %v3527_v40 = vunpack.i.l.bf16 %v2714_v45  ;;  %v621_v16 = vsel %vm206_vm2, %v616_v34, %v611_v48  ;;  %v3558_v50 = vunpack.i.l.bf16 %v2457_v18 }
  0xc0   :  { %1212 = vmatpush.msrb.mxu3 %v356_v54  ;;  %1165 = vmatpush.msrb.mxu1 %v2204_v7  ;;  %v3559_v17 = vunpack.i.h.bf16 %v2457_v18  ;;  %v3525_v58 = vunpack.i.l.bf16 %v2703_v15  ;;  %v280_v48 = vsel %vm232_vm3, %v270_v60, %v2375_v28  ;;  %v194_v54 = vrot.slane %v2552_v12, 7 }
  0xc1   :  { %1012 = vmatpush.msra.mxu0 %v253_v6  ;;  %1855 = vmatpush.msra.mxu2 %v253_v6  ;;  %v2746_v10 = vsel %vm183_vm4, %v3558_v50, %v3524_v19  ;;  %v199_v34 = vrot.slane %v2558_v57, 7  ;;  %v415_v50 = vsel %vm206_vm2, %v410_v27, %v405_v61  ;;  %v3560_v12 = vunpack.i.l.bf16 %v2496_v30  ;;  %v2780_v27 = vld [vmem:[#allocation8] sm:$0xff] }
  0xc2   :  { %1142 = vmatmul.f32.gmra.mxu3 %v2721_v62  ;;  %1166 = vmatpush.msrb.mxu1 %v2206_v8  ;;  %v2754_v6 = vsel %vm183_vm4, %v3559_v17, %v3522_v20  ;;  %v638_v60 = vrot.slane %v2746_v10, 1  ;;  %3561 = vst [vmem:[#allocation23_spill] sm:$0xff] %v2780_v27  ;;  %v658_v44 = vrot.slane %v2204_v7, 7  ;;  %v3568_v13 = vunpack.i.h.bf16 %v2387_v37 }
  0xc3   :  { %1213 = vmatpush.msrb.mxu3 %v693_v63  ;;  %1013 = vmatpush.msra.mxu0 %v621_v16  ;;  %v3526_v63 = vunpack.i.h.bf16 %v2714_v45  ;;  %v2776_v57 = vsel %vm183_vm4, %v3560_v12, %v3523_v29  ;;  %v207_v17 = vsel %vm206_vm2, %v199_v34, %v194_v54  ;;  %v3563_v12 = vunpack.i.l.bf16 %v2452_v39  ;;  %v2805_v19 = vpop.permute.xlu2 %2004  ;;  %v2808_v34 = vld [vmem:[#allocation8 + $0x28] sm:$0xff] }
  0xc4   :  { %1856 = vmatpush.msra.mxu2 %v621_v16  ;;  %1167 = vmatpush.msrb.mxu1 %v2208_v9  ;;  %v2764_v18 = vpop.permute.xlu0 %1994  ;;  %v2782_v61 = vpop.permute.xlu1 %1999  ;;  %v432_v54 = vrot.slane %v2776_v57, 1 }
  0xc5   :  { %1214 = vmatpush.msrb.mxu3 %v487_v49  ;;  %v3529_v16 = vunpack.i.l.bf16 %v2764_v18  ;;  %1014 = vmatpush.msra.mxu0 %v415_v50  ;;  %v643_v49 = vrot.slane %v2754_v6, 1  ;;  %v2795_v20 = vsel %vm183_vm4, %v3563_v12, %v3525_v58  ;;  %v3565_v12 = vunpack.i.h.bf16 %v2452_v39 }
  0xc6   :  { %1857 = vmatpush.msra.mxu2 %v415_v50  ;;  %1060 = vmatmul.f32.gmra.mxu1 %v2721_v62  ;;  %v2787_v50 = vld [vmem:[#allocation8 + $0x40] sm:$0xff]  ;;  %v733_v39 = vrot.slane %v2648_v0, 7  ;;  %v532_v62 = vrot.slane %v2639_v32, 7  ;;  %v3569_v32 = vunpack.i.h.bf16 %v2389_v38 }
  0xc7   :  { %1215 = vmatpush.msrb.mxu3 %v280_v48  ;;  %1168 = vmatpush.msrb.mxu1 %v2746_v10  ;;  %3562 = vst [vmem:[#allocation24_spill] sm:$0xff] %v2787_v50  ;;  %v3564_v48 = vunpack.i.h.bf16 %v2496_v30  ;;  %v2816_v58 = vsel %vm183_vm4, %v3565_v12, %v3526_v63  ;;  %v648_v30 = vsel %vm232_vm3, %v638_v60, %v643_v49  ;;  %v738_v12 = vrot.slane %v2664_v11, 7 }
  0xc8   :  { %1015 = vmatpush.msra.mxu0 %v207_v17  ;;  %1858 = vmatpush.msra.mxu2 %v207_v17  ;;  %v3566_v17 = vunpack.i.l.bf16 %v2612_v46  ;;  %v1997_v63 = vunpack.i.h.bf16 %v2764_v18  ;;  %v224_v60 = vrot.slane %v2795_v20, 1 }
  0xc9   :  { %v2803_v29 = vsel %vm183_vm4, %v3564_v48, %v3527_v40  ;;  %1169 = vmatpush.msrb.mxu1 %v2776_v57  ;;  %1016 = vmatmul.f32.vlgmr.msra.gmra.mxu0 %v2780_v27  ;;  %v2001_v40 = vunpack.i.l.bf16 %v2782_v61 }
  0xca   :  { %v2828_v48 = vsel %vm308_vm1, %v3566_v17, %v3529_v16  ;;  %1028 = vmatmul.f32.vlgmr.msra.gmra.mxu2 %v2787_v50  ;;  %1216 = vmatpush.msrb.mxu3 %v648_v30  ;;  %v437_v49 = vrot.slane %v2803_v29, 1  ;;  %v229_v30 = vrot.slane %v2816_v58, 1  ;;  %v527_v50 = vrot.slane %v2656_v35, 7 }
  0xcb   :  { %1082 = vmatpush.msrb.mxu2 %v2325_v52  ;;  %1145 = vmatmul.f32.gmra.mxu3 %v2808_v34  ;;  %v743_v17 = vsel %vm206_vm2, %v738_v12, %v733_v39  ;;  %v3571_v12 = vunpack.i.h.bf16 %v2295_v43 }
  0xcc   :  { %1170 = vmatpush.msrb.mxu1 %v2795_v20  ;;  %1246 = vmatpush.msrb.mxu0 %v2828_v48  ;;  %v442_v11 = vsel %vm232_vm3, %v432_v54, %v437_v49  ;;  %v2846_v16 = vpop.permute.xlu0 %2009  ;;  %v321_v54 = vrot.slane %v2672_v59, 7  ;;  %v3567_v49 = vunpack.i.l.bf16 %v2387_v37  ;;  %v235_v7 = vsel %vm232_vm3, %v224_v60, %v229_v30 }
  0xcd   :  { %1083 = vmatpush.msrb.mxu2 %v2190_v1  ;;  %1217 = vmatpush.msrb.mxu3 %v442_v11  ;;  %v2866_v1 = vsel %vm308_vm1, %v2001_v40, %v3568_v13  ;;  %v3570_v59 = vunpack.i.l.bf16 %v2805_v19  ;;  %v2011_v37 = vunpack.i.l.bf16 %v2846_v16  ;;  %v326_v13 = vrot.slane %v2689_v33, 7 }
  0xce   :  { %v2860_v27 = vsel %vm308_vm1, %v1997_v63, %v3567_v49  ;;  %1171 = vmatpush.msrb.mxu1 %v743_v17  ;;  %1247 = vmatpush.msrb.mxu0 %v2233_v23  ;;  %v3572_v17 = vunpack.i.h.bf16 %v2805_v19  ;;  %v537_v11 = vsel %vm206_vm2, %v532_v62, %v527_v50  ;;  %v452_v30 = vrot.slane %v2206_v8, 7  ;;  %v2908_v62 = vld [vmem:[#allocation8 + $0x50] sm:$0xff]  ;;  %v3607_v51 = vld [vmem:[#allocation24_spill] sm:$0xff] }
  0xcf   :  { %v2877_v39 = vsel %vm308_vm1, %v3570_v59, %v3569_v32  ;;  %1084 = vmatpush.msrb.mxu2 %v2192_v2  ;;  %1218 = vmatpush.msrb.mxu3 %v235_v7  ;;  %v2894_v2 = vld [vmem:[#allocation8 + $0x10] sm:$0xff]  ;;  %v406_v33 = vrot.slane %v2510_v21, 7  ;;  %v3573_v49 = vunpack.i.l.bf16 %v2389_v38  ;;  %v3574_v7 = vunpack.i.h.bf16 %v2782_v61 }
  0xd0   :  { %v2888_v60 = vsel %vm308_vm1, %v3572_v17, %v3571_v12  ;;  %1063 = vmatmul.f32.gmra.mxu1 %v2808_v34  ;;  %1248 = vmatpush.msrb.mxu0 %v2237_v24  ;;  %v765_v59 = vrot.slane %v2866_v1, 1  ;;  %v760_v50 = vrot.slane %v2860_v27, 1  ;;  %v411_v8 = vrot.slane %v2522_v42, 7 }
  0xd1   :  { %v2904_v32 = vsel %vm308_vm1, %v3574_v7, %v3573_v49  ;;  %1172 = vmatpush.msrb.mxu1 %v537_v11  ;;  %1085 = vmatpush.msrb.mxu2 %v2194_v3  ;;  %v3575_v12 = vunpack.i.h.bf16 %v2612_v46  ;;  %v331_v17 = vsel %vm206_vm2, %v326_v13, %v321_v54  ;;  %v2922_v3 = vld [vmem:[#allocation8 + $0x38] sm:$0xff]  ;;  %v668_v11 = vsel %vm206_vm2, %v2623_v4, %v658_v44  ;;  %v2928_v46 = vpop.permute.xlu1 %2014 }
  0xd2   :  { %1219 = vmatpush.msrb.mxu3 %v2648_v0  ;;  %1249 = vmatpush.msrb.mxu0 %v2231_v22  ;;  %v559_v42 = vrot.slane %v2877_v39, 1  ;;  %v3576_v0 = vunpack.i.l.bf16 %v2701_v14  ;;  %v245_v54 = vrot.slane %v2208_v9, 7  ;;  %v3577_v13 = vunpack.i.l.bf16 %v2614_v5 }
  0xd3   :  { %v2916_v38 = vsel %vm308_vm1, %v3575_v12, %v1997_v63  ;;  %1173 = vmatpush.msrb.mxu1 %v331_v17  ;;  %1019 = vmatmul.f32.gmra.mxu0 %v2894_v2  ;;  %v3578_v49 = vunpack.i.l.bf16 %v2295_v43  ;;  %v3579_v7 = vunpack.i.l.bf16 %v2764_v18  ;;  %v3538_v17 = vunpack.i.h.bf16 %v2846_v16  ;;  %v952_v18 = vld [vmem:[%s3486_s2] sm:$0xff] }
  0xd4   :  { %v2937_v63 = vsel %vm183_vm4, %v3576_v0, %v2011_v37  ;;  %v2944_v44 = vsel %vm308_vm1, %v3577_v13, %v2001_v40  ;;  %1031 = vmatmul.f32.gmra.mxu2 %v2908_v62  ;;  %1220 = vmatpush.msrb.mxu3 %v2656_v35  ;;  %v462_v9 = vsel %vm206_vm2, %v2623_v4, %v452_v30  ;;  %v554_v40 = vrot.slane %v2904_v32, 1 }
  0xd5   :  { %v2952_v12 = vsel %vm308_vm1, %v3579_v7, %v3578_v49  ;;  %1086 = vmatpush.msrb.mxu2 %v2476_v31  ;;  %1148 = vmatmul.f32.gmra.mxu3 %v2922_v3  ;;  %v770_v43 = vsel %vm232_vm3, %v760_v50, %v765_v59  ;;  %v734_v0 = vrot.slane %v2916_v38, 7  ;;  %v2971_v35 = vsel %vm206_vm2, %v411_v8, %v406_v33 }
  0xd6   :  { %v195_v30 = vrot.slane %v2516_v56, 7  ;;  %v2016_v13 = vunpack.i.l.bf16 %v2928_v46  ;;  %1174 = vmatpush.msrb.mxu1 %v668_v11  ;;  %1250 = vmatpush.msrb.mxu0 %v2937_v63  ;;  %v3580_v31 = vunpack.i.h.bf16 %v2701_v14  ;;  %v739_v50 = vrot.slane %v2944_v44, 7 }
  0xd7   :  { %v200_v33 = vrot.slane %v2528_v47, 7  ;;  %v3581_v8 = vunpack.i.h.bf16 %v2782_v61  ;;  %v3582_v49 = vunpack.i.h.bf16 %v2614_v5  ;;  %1374 = vmatpush.msra.mxu3 %v770_v43  ;;  %v2150_v7 = vmov 0   ;;  %1087 = vmatpush.msrb.mxu2 %v2510_v21 }
  0xd8   :  { %v2982_v59 = vsel %vm183_vm4, %v3580_v31, %v3538_v17  ;;  %2023 = vset.pattern.permute.xlu0 %v2150_v7  ;;  %v348_v14 = vrot.slane %v2952_v12, 1  ;;  %v685_v31 = vrot.slane %v2246_v25, 1  ;;  %v3583_v17 = vunpack.i.l.bf16 %v2805_v19  ;;  %1175 = vmatpush.msrb.mxu1 %v462_v9 }
  0xd9   :  { %v2992_v11 = vsel %vm308_vm1, %v3582_v49, %v3581_v8  ;;  %v3584_v47 = vunpack.i.l.bf16 %v2560_v55  ;;  %962 = vperm.xlu0 %2023, %v952_v18   ;;  %v255_v5 = vsel %vm206_vm2, %v2623_v4, %v245_v54  ;;  %v3585_v43 = vunpack.i.l.bf16 %v2703_v15  ;;  %1251 = vmatpush.msrb.mxu0 %v2982_v59 }
  0xda   :  { %v353_v8 = vrot.slane %v2888_v60, 1  ;;  %v613_v21 = vrot.slane %v2746_v10, 7  ;;  %v564_v54 = vsel %vm232_vm3, %v554_v40, %v559_v42  ;;  %v618_v18 = vrot.slane %v2754_v6, 7  ;;  %1088 = vmatpush.msrb.mxu2 %v2516_v56  ;;  %v3041_v6 = vpop.permute.xlu2 %2019  ;;  %1066 = vmatmul.f32.gmra.mxu1 %v2922_v3  ;;  %v3052_v40 = vld [vmem:[#allocation8 + $0x20] sm:$0xff] }
  0xdb   :  { %v3003_v61 = vsel %vm308_vm1, %v3584_v47, %v3583_v17  ;;  %v3015_v25 = vsel %vm183_vm4, %v3585_v43, %v2016_v13  ;;  %v3020_v17 = vsel %vm206_vm2, %v200_v33, %v195_v30  ;;  %v479_v49 = vrot.slane %v2248_v26, 1  ;;  %1375 = vmatpush.msra.mxu3 %v564_v54  ;;  %1176 = vmatpush.msrb.mxu1 %v255_v5 }
  0xdc   :  { %v744_v47 = vsel %vm206_vm2, %v739_v50, %v734_v0  ;;  %v528_v30 = vrot.slane %v2992_v11, 7  ;;  %v533_v10 = vrot.slane %v3003_v61, 7  ;;  %v3586_v9 = vunpack.i.h.bf16 %v2805_v19  ;;  %1252 = vmatpush.msrb.mxu0 %v3015_v25  ;;  %v3054_v0 = vld [vmem:[#allocation8 + $0x60] sm:$0xff]  ;;  %1089 = vmatpush.msrb.mxu2 %v2385_v36 }
  0xdd   :  { %v3587_v33 = vunpack.i.h.bf16 %v2560_v55  ;;  %v2017_v26 = vunpack.i.h.bf16 %v2928_v46  ;;  %v358_v56 = vsel %vm232_vm3, %v348_v14, %v353_v8  ;;  %v695_v19 = vsel %vm232_vm3, %v685_v31, %v2375_v28  ;;  %v3588_v8 = vld [vmem:[#allocation15_spill] sm:$0xff]  ;;  %1022 = vmatmul.f32.gmra.mxu0 %v3052_v40  ;;  %1034 = vmatmul.f32.gmra.mxu2 %v3054_v0 }
  0xde   :  { %v407_v55 = vrot.slane %v2776_v57, 7  ;;  %1376 = vmatpush.msra.mxu3 %v358_v56  ;;  %v412_v50 = vrot.slane %v2803_v29, 7  ;;  %v320_v43 = vrot.slane %v2325_v52, 7  ;;  %v325_v54 = vrot.slane %v2332_v53, 7  ;;  %1253 = vmatpush.msrb.mxu0 %v744_v47  ;;  %v3063_v57 = vld [vmem:[#allocation8 + $0x48] sm:$0xff]  ;;  %v2026_v36 = vld [vmem:[#allocation2 + $0xa8] sm:$0xff] }
  0xdf   :  { %v3039_v42 = vsel %vm308_vm1, %v3587_v33, %v3586_v9  ;;  %v322_v14 = vrot.slane %v2828_v48, 7  ;;  %v623_v31 = vsel %vm206_vm2, %v618_v18, %v613_v21  ;;  %v272_v9 = vrot.slane %v3588_v8, 1  ;;  %v3589_v47 = vld [vmem:[#allocation19_spill] sm:$0xff]  ;;  %1151 = vmatmul.f32.gmra.mxu3 %v3063_v57  ;;  %2024 = vset.pattern.permute.xlu1 %v2150_v7 }
  0xe0   :  { %v327_v5 = vrot.slane %v3039_v42, 7  ;;  %v2021_v29 = vunpack.i.l.bf16 %v3041_v6  ;;  %1177 = vmatpush.msrb.mxu1 %v623_v31  ;;  %1377 = vmatpush.msra.mxu3 %v695_v19  ;;  %v538_v52 = vsel %vm206_vm2, %v533_v10, %v528_v30  ;;  %v489_v53 = vsel %vm232_vm3, %v479_v49, %v2375_v28  ;;  %v3592_v49 = vld [vmem:[#allocation16_spill] sm:$0xff]  ;;  %v953_v31 = vld [vmem:[%s3486_s2 + $0x8] sm:$0xff] }
  0xe1   :  { %v657_v21 = vrot.slane %v2026_v36, 7  ;;  %v196_v18 = vrot.slane %v2795_v20, 7  ;;  %v3590_v33 = vunpack.i.l.bf16 %v3589_v47  ;;  %v3591_v19 = vunpack.i.h.bf16 %v3589_v47  ;;  %1090 = vmatpush.msrb.mxu2 %v3592_v49  ;;  %v3593_v36 = vld [vmem:[#allocation20_spill] sm:$0xff]  ;;  %1254 = vmatpush.msrb.mxu0 %v538_v52 }
  0xe2   :  { %v659_v20 = vrot.slane %v2233_v23, 7  ;;  %v330_v10 = vsel %vm206_vm2, %v325_v54, %v320_v43  ;;  %v201_v8 = vrot.slane %v2816_v58, 7  ;;  %v3594_v47 = vunpack.i.l.bf16 %v3593_v36  ;;  %v2027_v43 = vld [vmem:[#allocation2 + $0x58] sm:$0xff]  ;;  %1378 = vmatpush.msra.mxu3 %v489_v53  ;;  %967 = vperm.xlu1 %2024, %v953_v31  }
  0xe3   :  { %v3080_v56 = vsel %vm183_vm4, %v2011_v37, %v3590_v33  ;;  %v3088_v30 = vsel %vm183_vm4, %v2017_v26, %v3591_v19  ;;  %v417_v37 = vsel %vm206_vm2, %v412_v50, %v407_v55  ;;  %v3595_v23 = vunpack.i.h.bf16 %v2846_v16  ;;  %1091 = vmatpush.msrb.mxu2 %v330_v10  ;;  %v3598_v31 = vld [vmem:[#allocation17_spill] sm:$0xff]  ;;  %1069 = vmatmul.f32.gmra.mxu1 %v3063_v57 }
  0xe4   :  { %1178 = vmatpush.msrb.mxu1 %v417_v37  ;;  %v332_v55 = vsel %vm206_vm2, %v327_v5, %v322_v14  ;;  %v282_v50 = vsel %vm232_vm3, %v272_v9, %v2375_v28  ;;  %v451_v54 = vrot.slane %v2027_v43, 7  ;;  %v667_v58 = vsel %vm206_vm2, %v2623_v4, %v657_v21  ;;  %v3179_v43 = vld [vmem:[#allocation8 + $0x70] sm:$0xff]  ;;  %2025 = vset.pattern.permute.xlu2 %v2150_v7 }
  0xe5   :  { %v3109_v33 = vsel %vm183_vm4, %v3595_v23, %v3594_v47  ;;  %v640_v16 = vrot.slane %v3080_v56, 1  ;;  %v645_v52 = vrot.slane %v3088_v30, 1  ;;  %v453_v19 = vrot.slane %v2237_v24, 7  ;;  %1255 = vmatpush.msrb.mxu0 %v332_v55  ;;  %1379 = vmatpush.msra.mxu3 %v282_v50  ;;  %v3177_v50 = vld [vmem:[#allocation8 + $0x30] sm:$0xff] }
  0xe6   :  { %v2022_v14 = vunpack.i.h.bf16 %v3041_v6  ;;  %v3596_v5 = vunpack.i.h.bf16 %v3593_v36  ;;  %v209_v53 = vsel %vm206_vm2, %v201_v8, %v196_v18  ;;  %v669_v21 = vsel %vm206_vm2, %v2623_v4, %v659_v20  ;;  %v2028_v6 = vld [vmem:[#allocation2 + $0x8] sm:$0xff]  ;;  %1092 = vmatpush.msrb.mxu2 %v667_v58  ;;  %1025 = vmatmul.f32.gmra.mxu0 %v3177_v50 }
  0xe7   :  { %1179 = vmatpush.msrb.mxu1 %v209_v53  ;;  %v434_v24 = vrot.slane %v3109_v33, 1  ;;  %v244_v49 = vrot.slane %v2028_v6, 7  ;;  %v3597_v37 = vunpack.i.h.bf16 %v2703_v15  ;;  %v3599_v18 = vunpack.i.l.bf16 %v3598_v31  ;;  %1256 = vmatpush.msrb.mxu0 %v669_v21 }
  0xe8   :  { %v3128_v9 = vsel %vm183_vm4, %v2021_v29, %v3596_v5  ;;  %v461_v8 = vsel %vm206_vm2, %v2623_v4, %v451_v54  ;;  %v246_v15 = vrot.slane %v2231_v22, 7  ;;  %v463_v46 = vsel %vm206_vm2, %v2623_v4, %v453_v19  ;;  %v3192_v5 = vld [vmem:[#allocation8 + $0x58] sm:$0xff]  ;;  %1037 = vmatmul.f32.gmra.mxu2 %v3179_v43 }
  0xe9   :  { %v3142_v10 = vsel %vm183_vm4, %v3597_v37, %v2017_v26  ;;  %v3150_v20 = vsel %vm183_vm4, %v2016_v13, %v3599_v18  ;;  %1328 = vmatpush.msra.mxu1 %v2952_v12  ;;  %v650_v26 = vsel %vm232_vm3, %v640_v16, %v645_v52  ;;  %v439_v13 = vrot.slane %v3128_v9, 1  ;;  %1093 = vmatpush.msrb.mxu2 %v461_v8  ;;  %v3207_v37 = vld [vmem:[#allocation2 + $0x70] sm:$0xff]  ;;  %v3603_v18 = vld [vmem:[#allocation18_spill] sm:$0xff] }
  0xea   :  { %v3600_v36 = vunpack.i.l.bf16 %v2714_v45  ;;  %v3601_v22 = vunpack.i.h.bf16 %v3598_v31  ;;  %v614_v55 = vrot.slane %v2937_v63, 7  ;;  %1380 = vmatpush.msra.mxu3 %v650_v26  ;;  %v619_v54 = vrot.slane %v3142_v10, 7  ;;  %1257 = vmatpush.msrb.mxu0 %v463_v46  ;;  %v3221_v26 = vld [vmem:[#allocation2 + $0x20] sm:$0xff] }
  0xeb   :  { %v444_v58 = vsel %vm232_vm3, %v434_v24, %v439_v13  ;;  %v254_v16 = vsel %vm206_vm2, %v2623_v4, %v244_v49  ;;  %v226_v52 = vrot.slane %v3150_v20, 1  ;;  %v408_v19 = vrot.slane %v2982_v59, 7  ;;  %1154 = vmatmul.f32.gmra.mxu3 %v3192_v5  ;;  %1072 = vmatmul.f32.gmra.mxu1 %v3192_v5 }
  0xec   :  { %v3167_v47 = vsel %vm183_vm4, %v3600_v36, %v2021_v29  ;;  %v3173_v23 = vsel %vm183_vm4, %v2022_v14, %v3601_v22  ;;  %v3182_v29 = vld [vmem:[#allocation2 + $0xc0] sm:$0xff]  ;;  %1381 = vmatpush.msra.mxu3 %v444_v58  ;;  %v256_v53 = vsel %vm206_vm2, %v2623_v4, %v246_v15  ;;  %v3602_v24 = vunpack.i.h.bf16 %v2714_v45  ;;  %1094 = vmatpush.msrb.mxu2 %v254_v16  ;;  %v3238_v22 = vld [vmem:[#allocation8 + $0x68] sm:$0xff]  ;;  %v2032_v16 = vld [vmem:[#allocation2 + $0xb8] sm:$0xff] }
  0xed   :  { %1329 = vmatpush.msra.mxu1 %v3182_v29  ;;  %v413_v21 = vrot.slane %v3167_v47, 7  ;;  %v231_v49 = vrot.slane %v3173_v23, 1  ;;  %v624_v31 = vsel %vm206_vm2, %v619_v54, %v614_v55  ;;  %v197_v45 = vrot.slane %v3015_v25, 7  ;;  %1258 = vmatpush.msrb.mxu0 %v256_v53 }
  0xee   :  { %v3202_v6 = vsel %vm183_vm4, %v3602_v24, %v2022_v14  ;;  %1095 = vmatpush.msrb.mxu2 %v3603_v18  ;;  %v764_v15 = vrot.slane %v2944_v44, 1  ;;  %v759_v46 = vrot.slane %v2916_v38, 1  ;;  %v553_v44 = vrot.slane %v2992_v11, 1 }
  0xef   :  { %1330 = vmatpush.msra.mxu1 %v3207_v37  ;;  %v237_v41 = vsel %vm232_vm3, %v226_v52, %v231_v49  ;;  %v202_v14 = vrot.slane %v3202_v6, 7  ;;  %v418_v8 = vsel %vm206_vm2, %v413_v21, %v408_v19  ;;  %1259 = vmatpush.msrb.mxu0 %v624_v31  ;;  %v558_v36 = vrot.slane %v3003_v61, 1  ;;  %v955_v61 = vld [vmem:[%s3486_s2 + $0x18] sm:$0xff]  ;;  %v3604_v19 = vld [vmem:[#allocation23_spill] sm:$0xff]  ;;  %v954_v31 = vld [vmem:[%s3486_s2 + $0x10] sm:$0xff] }
  0xf0   :  { %1382 = vmatpush.msra.mxu3 %v237_v41  ;;  %1096 = vmatpush.msrb.mxu2 %v2971_v35  ;;  %v769_v35 = vsel %vm232_vm3, %v759_v46, %v764_v15  ;;  %v735_v55 = vrot.slane %v2860_v27, 7  ;;  %v740_v54 = vrot.slane %v2866_v1, 7  ;;  %v347_v58 = vrot.slane %v2828_v48, 1  ;;  %v957_v48 = vld [vmem:[%s3486_s2 + $0x28] sm:$0xff]  ;;  %v3286_v46 = vld [vmem:[#allocation8 + $0x78] sm:$0xff] }
  0xf1   :  { %1331 = vmatpush.msra.mxu1 %v3221_v26  ;;  %1260 = vmatpush.msrb.mxu0 %v418_v8  ;;  %v210_v13 = vsel %vm206_vm2, %v202_v14, %v197_v45  ;;  %v684_v52 = vrot.slane %v2032_v16, 1  ;;  %v563_v1 = vsel %vm232_vm3, %v553_v44, %v558_v36  ;;  %v323_v24 = vrot.slane %v2952_v12, 7  ;;  %v2034_v14 = vld [vmem:[#allocation2 + $0x18] sm:$0xff] }
  0xf2   :  { %1383 = vmatpush.msra.mxu3 %v2860_v27  ;;  %1097 = vmatpush.msrb.mxu2 %v3020_v17  ;;  %v352_v17 = vrot.slane %v3039_v42, 1  ;;  %v529_v27 = vrot.slane %v2904_v32, 7  ;;  %v2033_v42 = vld [vmem:[#allocation2 + $0x68] sm:$0xff]  ;;  %v745_v21 = vsel %vm206_vm2, %v740_v54, %v735_v55  ;;  %v660_v49 = vrot.slane %v3182_v29, 7  ;;  %v3605_v16 = vld [vmem:[#allocation21_spill] sm:$0xff] }
  0xf3   :  { %1332 = vmatpush.msra.mxu1 %v3080_v56  ;;  %1261 = vmatpush.msrb.mxu0 %v210_v13  ;;  %v478_v53 = vrot.slane %v2033_v42, 1  ;;  %v694_v41 = vsel %vm232_vm3, %v684_v52, %v2375_v28  ;;  %v271_v18 = vrot.slane %v2034_v14, 1  ;;  %v328_v12 = vrot.slane %v2888_v60, 7  ;;  %v1543_v52 = vld [vmem:[#allocation10 + $0x68] sm:$0xff]  ;;  %v1530_v14 = vld [vmem:[#allocation10] sm:$0xff] }
  0xf4   :  { %1384 = vmatpush.msra.mxu3 %v2904_v32  ;;  %1292 = vmatpush.msra.mxu2 %v769_v35  ;;  %v534_v32 = vrot.slane %v2877_v39, 7  ;;  %v357_v45 = vsel %vm232_vm3, %v347_v58, %v352_v17  ;;  %v454_v29 = vrot.slane %v3207_v37, 7  ;;  %v670_v60 = vsel %vm206_vm2, %v2623_v4, %v660_v49  ;;  %v1539_v42 = vld [vmem:[#allocation10 + $0x48] sm:$0xff]  ;;  %v1534_v49 = vld [vmem:[#allocation10 + $0x20] sm:$0xff] }
  0xf5   :  { %1333 = vmatpush.msra.mxu1 %v3109_v33  ;;  %1098 = vmatmul.f32.vlgmr.msrb.gmra.mxu2 %v3604_v19  ;;  %v488_v8 = vsel %vm232_vm3, %v478_v53, %v2375_v28  ;;  %v333_v15 = vsel %vm206_vm2, %v328_v12, %v323_v24  ;;  %v247_v37 = vrot.slane %v3221_v26, 7  ;;  %v639_v7 = vrot.slane %v2937_v63, 1  ;;  %v958_v63 = vld [vmem:[%s3486_s2 + $0x30] sm:$0xff]  ;;  %v1538_v53 = vld [vmem:[#allocation10 + $0x40] sm:$0xff]  ;;  %v1561_v12 = vld [vmem:[#allocation10 + $0xf8] sm:$0xff] }
  0xf6   :  { %1262 = vmatmul.f32.vlgmr.msrb.gmra.mxu0 %v3604_v19  ;;  %1157 = vmatmul.f32.gmra.mxu3 %v3238_v22  ;;  %v539_v39 = vsel %vm206_vm2, %v534_v32, %v529_v27  ;;  %v281_v13 = vsel %vm232_vm3, %v271_v18, %v2375_v28  ;;  %v644_v44 = vrot.slane %v3142_v10, 1  ;;  %v464_v36 = vsel %vm206_vm2, %v2623_v4, %v454_v29  ;;  %v1542_v27 = vld [vmem:[#allocation10 + $0x60] sm:$0xff]  ;;  %v1536_v32 = vld [vmem:[#allocation10 + $0x30] sm:$0xff]  ;;  %v1535_v24 = vld [vmem:[#allocation10 + $0x28] sm:$0xff] }
  0xf7   :  { %1334 = vmatpush.msra.mxu1 %v3150_v20  ;;  %1293 = vmatpush.msra.mxu2 %v563_v1  ;;  %v433_v26 = vrot.slane %v2982_v59, 1  ;;  %v438_v28 = vrot.slane %v3167_v47, 1  ;;  %v257_v10 = vsel %vm206_vm2, %v2623_v4, %v247_v37  ;;  %v615_v35 = vrot.slane %v3080_v56, 7  ;;  %v956_v59 = vld [vmem:[%s3486_s2 + $0x20] sm:$0xff]  ;;  %v1540_v1 = vld [vmem:[#allocation10 + $0x50] sm:$0xff]  ;;  %v1558_v37 = vld [vmem:[#allocation10 + $0xe0] sm:$0xff] }
  0xf8   :  { %977 = vperm.xlu1 %2024, %v955_v61   ;;  %987 = vperm.xlu0 %2023, %v957_v48   ;;  %v620_v55 = vrot.slane %v3088_v30, 7  ;;  %v225_v54 = vrot.slane %v3015_v25, 1  ;;  %v649_v47 = vsel %vm232_vm3, %v639_v7, %v644_v44  ;;  %v230_v58 = vrot.slane %v3202_v6, 1  ;;  %v1541_v48 = vld [vmem:[#allocation10 + $0x58] sm:$0xff]  ;;  %v1560_v29 = vld [vmem:[#allocation10 + $0xf0] sm:$0xff] }
  0xf9   :  { %1335 = vmatpush.msra.mxu1 %v745_v21  ;;  %1294 = vmatpush.msra.mxu2 %v357_v45  ;;  %v409_v4 = vrot.slane %v3109_v33, 7  ;;  %v443_v56 = vsel %vm232_vm3, %v433_v26, %v438_v28  ;;  %v414_v30 = vrot.slane %v3128_v9, 7  ;;  %v198_v61 = vrot.slane %v3150_v20, 7  ;;  %v959_v20 = vld [vmem:[%s3486_s2 + $0x38] sm:$0xff]  ;;  %v1537_v21 = vld [vmem:[#allocation10 + $0x38] sm:$0xff]  ;;  %v1555_v28 = vld [vmem:[#allocation10 + $0xc8] sm:$0xff] }
  0xfa   :  { %972 = vperm.xlu2 %2025, %v954_v31   ;;  %1075 = vmatmul.f32.gmra.mxu1 %v3238_v22  ;;  %v625_v25 = vsel %vm206_vm2, %v620_v55, %v615_v35  ;;  %v236_v6 = vsel %vm232_vm3, %v225_v54, %v230_v58  ;;  %v203_v17 = vrot.slane %v3173_v23, 7  ;;  %v3606_v23 = vld [vmem:[#allocation22_spill] sm:$0xff]  ;;  %v1532_v45 = vld [vmem:[#allocation10 + $0x10] sm:$0xff]  ;;  %v1554_v35 = vld [vmem:[#allocation10 + $0xc0] sm:$0xff]  ;;  %s2151_s2 = smov [#allocation11]  }
  0xfb   :  { %1336 = vmatpush.msra.mxu1 %v539_v39  ;;  %1295 = vmatpush.msra.mxu2 %v694_v41  ;;  %v419_v33 = vsel %vm206_vm2, %v414_v30, %v409_v4  ;;  %v1533_v31 = vld [vmem:[#allocation10 + $0x18] sm:$0xff]  ;;  %v1531_v41 = vld [vmem:[#allocation10 + $0x8] sm:$0xff]  ;;  %v1576_v58 = vld [vmem:[#allocation10 + $0x170] sm:$0xff]  ;;  %s1827_s25 = sshll.u32 %s2151_s2, 4  ;;  %s1828_s25 = int_to_ptr.vmem [resolvable:$true] %s1827_s25 }
  0xfc   :  { %v211_v9 = vsel %vm206_vm2, %v203_v17, %v198_v61  ;;  %v1577_v54 = vld [vmem:[#allocation10 + $0x178] sm:$0xff]  ;;  %v1575_v30 = vld [vmem:[#allocation10 + $0x168] sm:$0xff] }
  0xfd   :  { %1337 = vmatpush.msra.mxu1 %v333_v15  ;;  %1296 = vmatpush.msra.mxu2 %v488_v8  ;;  %v1559_v8 = vld [vmem:[#allocation10 + $0xe8] sm:$0xff] }
  0xfe   :  { %1265 = vmatmul.f32.gmra.mxu0 %v2894_v2  ;;  %1101 = vmatmul.f32.gmra.mxu2 %v2894_v2  ;;  %v2035_v15 = vld [vmem:[#allocation8 + $0x8] sm:$0xff] }
  0xff   :  { %1338 = vmatpush.msra.mxu1 %v670_v60  ;;  %1160 = vmatmul.f32.gmra.mxu3 %v3286_v46  ;;  %v1551_v61 = vld [vmem:[#allocation10 + $0xa8] sm:$0xff] }
 0x100   :  { %1297 = vmatpush.msra.mxu2 %v281_v13  ;;  %992 = vperm.xlu1 %2024, %v958_v63   ;;  %v1557_v13 = vld [vmem:[#allocation10 + $0xd8] sm:$0xff]  ;;  %v1556_v63 = vld [vmem:[#allocation10 + $0xd0] sm:$0xff] }
 0x101   :  { %1339 = vmatpush.msra.mxu1 %v464_v36 }
 0x102   :  { %1298 = vmatpush.msra.mxu2 %v649_v47  ;;  %982 = vperm.xlu2 %2025, %v956_v59  }
 0x103   :  { %1340 = vmatpush.msra.mxu1 %v257_v10 }
 0x104   :  { %1078 = vmatmul.f32.gmra.mxu1 %v3286_v46  ;;  %1299 = vmatpush.msra.mxu2 %v443_v56 }
 0x105   :  { %1341 = vmatpush.msra.mxu1 %v625_v25  ;;  %v1552_v25 = vld [vmem:[#allocation10 + $0xb0] sm:$0xff] }
 0x106   :  { %1300 = vmatpush.msra.mxu2 %v236_v6  ;;  %1268 = vmatmul.f32.gmra.mxu0 %v3052_v40  ;;  %v1574_v6 = vld [vmem:[#allocation10 + $0x160] sm:$0xff] }
 0x107   :  { %1104 = vmatmul.f32.gmra.mxu2 %v3052_v40  ;;  %1342 = vmatpush.msra.mxu1 %v419_v33 }
 0x108   :  { %1221 = vmatmul.f32.vlgmr.msrb.gmra.mxu3 %v3605_v16  ;;  %1301 = vmatpush.msra.mxu2 %v2916_v38  ;;  %v1545_v38 = vld [vmem:[#allocation10 + $0x78] sm:$0xff] }
 0x109   :  { %1343 = vmatpush.msra.mxu1 %v211_v9  ;;  %1610 = vmatpush.msra.mxu0 %v1545_v38  ;;  %v1573_v9 = vld [vmem:[#allocation10 + $0x158] sm:$0xff] }
 0x10a   :  { %1302 = vmatpush.msra.mxu2 %v2992_v11  ;;  %997 = vperm.xlu2 %2025, %v959_v20   ;;  %v1544_v11 = vld [vmem:[#allocation10 + $0x70] sm:$0xff] }
 0x10b   :  { %1611 = vmatpush.msra.mxu0 %v1544_v11 }
 0x10c   :  { %1180 = vmatmul.f32.vlgmr.msrb.gmra.mxu1 %v3604_v19  ;;  %1651 = vmatpush.msrb.mxu2 %v1561_v12  ;;  %v1566_v12 = vld [vmem:[#allocation10 + $0x120] sm:$0xff] }
 0x10d   :  { %1612 = vmatpush.msra.mxu0 %v1543_v52  ;;  %1692 = vmatpush.msrb.mxu1 %v1577_v54 }
 0x10e   :  { %1271 = vmatmul.f32.gmra.mxu0 %v3177_v50  ;;  %1652 = vmatpush.msrb.mxu2 %v1560_v29 }
 0x10f   :  { %1107 = vmatmul.f32.gmra.mxu2 %v3177_v50  ;;  %1613 = vmatpush.msra.mxu0 %v1542_v27  ;;  %v1549_v27 = vld [vmem:[#allocation10 + $0x98] sm:$0xff] }
 0x110   :  { %1224 = vmatmul.f32.gmra.mxu3 %v3606_v23  ;;  %1653 = vmatpush.msrb.mxu2 %v1559_v8  ;;  %v1565_v8 = vld [vmem:[#allocation10 + $0x118] sm:$0xff] }
 0x111   :  { %1614 = vmatpush.msra.mxu0 %v1541_v48  ;;  %1693 = vmatpush.msrb.mxu1 %v1576_v58  ;;  %v1572_v48 = vld [vmem:[#allocation10 + $0x150] sm:$0xff]  ;;  %v1590_v58 = vld [vmem:[#allocation10 + $0x1e0] sm:$0xff] }
 0x112   :  { %1654 = vmatpush.msrb.mxu2 %v1558_v37 }
 0x113   :  { %1615 = vmatpush.msra.mxu0 %v1540_v1  ;;  %1694 = vmatpush.msrb.mxu1 %v1575_v30 }
 0x114   :  { %1183 = vmatmul.f32.gmra.mxu1 %v2894_v2  ;;  %1655 = vmatpush.msrb.mxu2 %v1557_v13  ;;  %v1564_v13 = vld [vmem:[#allocation10 + $0x110] sm:$0xff] }
 0x115   :  { %1616 = vmatpush.msra.mxu0 %v1539_v42  ;;  %1695 = vmatpush.msrb.mxu1 %v1574_v6  ;;  %v1548_v42 = vld [vmem:[#allocation10 + $0x90] sm:$0xff] }
 0x116   :  { %1274 = vmatmul.f32.gmra.mxu0 %v3607_v51  ;;  %1656 = vmatpush.msrb.mxu2 %v1556_v63 }
 0x117   :  { %1110 = vmatmul.f32.gmra.mxu2 %v3607_v51  ;;  %1617 = vmatpush.msra.mxu0 %v1538_v53  ;;  %v1571_v53 = vld [vmem:[#allocation10 + $0x148] sm:$0xff] }
 0x118   :  { %1227 = vmatmul.f32.gmra.mxu3 %v2808_v34  ;;  %1657 = vmatpush.msrb.mxu2 %v1555_v28 }
 0x119   :  { %1618 = vmatpush.msra.mxu0 %v1537_v21  ;;  %1696 = vmatpush.msrb.mxu1 %v1573_v9 }
 0x11a   :  { %1658 = vmatpush.msrb.mxu2 %v1554_v35 }
 0x11b   :  { %1619 = vmatpush.msra.mxu0 %v1536_v32  ;;  %1697 = vmatpush.msrb.mxu1 %v1572_v48  ;;  %v1547_v32 = vld [vmem:[#allocation10 + $0x88] sm:$0xff]  ;;  %v1606_v48 = vld [vmem:[#allocation10 + $0x260] sm:$0xff] }
 0x11c   :  { %1186 = vmatmul.f32.gmra.mxu1 %v3052_v40 }
 0x11d   :  { %1620 = vmatpush.msra.mxu0 %v1535_v24  ;;  %1698 = vmatpush.msrb.mxu1 %v1571_v53  ;;  %v1569_v24 = vld [vmem:[#allocation10 + $0x138] sm:$0xff] }
 0x11e   :  { %1277 = vmatmul.f32.gmra.mxu0 %v2908_v62 }
 0x11f   :  { %1113 = vmatmul.f32.gmra.mxu2 %v2908_v62  ;;  %1621 = vmatpush.msra.mxu0 %v1534_v49 }
 0x120   :  { %1230 = vmatmul.f32.gmra.mxu3 %v2922_v3 }
 0x121   :  { %1622 = vmatpush.msra.mxu0 %v1533_v31  ;;  %v1546_v31 = vld [vmem:[#allocation10 + $0x80] sm:$0xff] }
 0x123   :  { %1623 = vmatpush.msra.mxu0 %v1532_v45  ;;  %v1568_v45 = vld [vmem:[#allocation10 + $0x130] sm:$0xff] }
 0x124   :  { %1189 = vmatmul.f32.gmra.mxu1 %v3177_v50 }
 0x125   :  { %1624 = vmatpush.msra.mxu0 %v1531_v41 }
 0x126   :  { %1280 = vmatmul.f32.gmra.mxu0 %v3054_v0 }
 0x127   :  { %1116 = vmatmul.f32.gmra.mxu2 %v3054_v0  ;;  %1625 = vmatpush.msra.mxu0 %v1530_v14 }
 0x128   :  { %1233 = vmatmul.f32.gmra.mxu3 %v3063_v57 }
 0x12c   :  { %1192 = vmatmul.f32.gmra.mxu1 %v3607_v51 }
 0x12e   :  { %1283 = vmatmul.f32.gmra.mxu0 %v3179_v43 }
 0x12f   :  { %1119 = vmatmul.f32.gmra.mxu2 %v3179_v43 }
 0x130   :  { %1236 = vmatmul.f32.gmra.mxu3 %v3192_v5 }
 0x134   :  { %1195 = vmatmul.f32.gmra.mxu1 %v2908_v62 }
 0x136   :  { %v3363_v39 = vpop.f32.mrf.mxu3 }
 0x137   :  { %1303 = vmatmul.f32.vlgmr.msra.gmra.mxu2 %v3605_v16  ;;  %v1550_v16 = vld [vmem:[#allocation10 + $0xa0] sm:$0xff] }
 0x138   :  { %1239 = vmatmul.f32.gmra.mxu3 %v3238_v22 }
 0x13a   :  { %v1058_v18 = vpop.f32.mrf.mxu1 }
 0x13c   :  { %1198 = vmatmul.f32.gmra.mxu1 %v3054_v0 }
 0x13f   :  { %1306 = vmatmul.f32.gmra.mxu2 %v3606_v23 }
 0x140   :  { %1242 = vmatmul.f32.gmra.mxu3 %v3286_v46 }
 0x143   :  { %v1061_v60 = vpop.f32.mrf.mxu1 }
 0x144   :  { %1201 = vmatmul.f32.gmra.mxu1 %v3179_v43 }
 0x145   :  { %v3368_v7 = vpop.f32.mrf.mxu3 }
 0x146   :  { %v1017_v44 = vpop.f32.mrf.mxu0 }
 0x147   :  { %1309 = vmatmul.f32.gmra.mxu2 %v2808_v34 }
 0x148   :  { %1385 = vmatmul.f32.vlgmr.msra.gmra.mxu3 %v2035_v15 }
 0x14b   :  { %v3371_v36 = vpop.permute.xlu0 %962 }
 0x14c   :  { %1344 = vmatmul.f32.vlgmr.msra.gmra.mxu1 %v3604_v19  ;;  %v1018_v26 = vadd.f32 %v1017_v44, %v3371_v36  ;;  %v1553_v19 = vld [vmem:[#allocation10 + $0xb8] sm:$0xff] }
 0x14d   :  { %v3376_v59 = vpop.f32.mrf.mxu2  ;;  %v1064_v47 = vpop.f32.mrf.mxu1  ;;  %1659 = vmatpush.msrb.mxu2 %v1553_v19  ;;  %v1593_v44 = vld [vmem:[#allocation10 + $0x1f8] sm:$0xff] }
 0x14e   :  { %v1059_v10 = vadd.f32 %v1058_v18, %v1018_v26  ;;  %v3378_v4 = vpop.f32.mrf.mxu3  ;;  %v1563_v26 = vld [vmem:[#allocation10 + $0x108] sm:$0xff]  ;;  %1733 = vmatpush.msrb.mxu3 %v1593_v44  ;;  %v1585_v44 = vld [vmem:[#allocation10 + $0x1b8] sm:$0xff] }
 0x14f   :  { %1312 = vmatmul.f32.gmra.mxu2 %v2922_v3 }
 0x150   :  { %1388 = vmatmul.f32.gmra.mxu3 %v3606_v23  ;;  %v1410_v55 = vmax.f32 %v1059_v10, 0.0  ;;  %v1020_v56 = vpop.f32.mrf.mxu0  ;;  %1660 = vmatpush.msrb.mxu2 %v1552_v25  ;;  %v1592_v10 = vld [vmem:[#allocation10 + $0x1f0] sm:$0xff] }
 0x151   :  { %1734 = vmatpush.msrb.mxu3 %v1592_v10 }
 0x152   :  { %1626 = vmatmul.f32.vlgmr.msra.gmra.mxu0 %v1410_v55  ;;  %1661 = vmatpush.msrb.mxu2 %v1551_v61  ;;  %v1562_v55 = vld [vmem:[#allocation10 + $0x100] sm:$0xff] }
 0x154   :  { %1347 = vmatmul.f32.gmra.mxu1 %v2894_v2  ;;  %v3382_v33 = vpop.permute.xlu1 %967  ;;  %1662 = vmatpush.msrb.mxu2 %v1550_v16  ;;  %v3391_v52 = vpop.permute.xlu2 %972 }
 0x155   :  { %v1021_v17 = vadd.f32 %v1020_v56, %v3382_v33 }
 0x156   :  { %1663 = vmatpush.msrb.mxu2 %v1549_v27 }
 0x157   :  { %1315 = vmatmul.f32.gmra.mxu2 %v3063_v57  ;;  %v1062_v2 = vadd.f32 %v1061_v60, %v1021_v17  ;;  %v3386_v20 = vpop.f32.mrf.mxu2  ;;  %v1067_v23 = vpop.f32.mrf.mxu1 }
 0x158   :  { %1391 = vmatmul.f32.gmra.mxu3 %v2808_v34  ;;  %v3389_v11 = vpop.f32.mrf.mxu3  ;;  %1664 = vmatpush.msrb.mxu2 %v1548_v42 }
 0x159   :  { %v1415_v38 = vmax.f32 %v1062_v2, 0.0 }
 0x15a   :  { %v1023_v34 = vpop.f32.mrf.mxu0  ;;  %1665 = vmatpush.msrb.mxu2 %v1547_v32  ;;  %v1587_v32 = vld [vmem:[#allocation10 + $0x1c8] sm:$0xff] }
 0x15b   :  { %1629 = vmatmul.f32.gmra.mxu0 %v1415_v38  ;;  %v1024_v1 = vadd.f32 %v1023_v34, %v3391_v52  ;;  %v1588_v38 = vld [vmem:[#allocation10 + $0x1d0] sm:$0xff] }
 0x15c   :  { %1350 = vmatmul.f32.gmra.mxu1 %v3052_v40  ;;  %v1570_v40 = vld [vmem:[#allocation10 + $0x140] sm:$0xff]  ;;  %1666 = vmatpush.msrb.mxu2 %v1546_v31  ;;  %v3407_v37 = vpop.permute.xlu2 %982  ;;  %v1604_v31 = vld [vmem:[#allocation10 + $0x250] sm:$0xff] }
 0x15d   :  { %v1065_v21 = vadd.f32 %v1064_v47, %v1024_v1  ;;  %1699 = vmatpush.msrb.mxu1 %v1570_v40  ;;  %v1591_v47 = vld [vmem:[#allocation10 + $0x1e8] sm:$0xff] }
 0x15e   :  { %1735 = vmatpush.msrb.mxu3 %v1591_v47 }
 0x15f   :  { %1318 = vmatmul.f32.gmra.mxu2 %v3192_v5  ;;  %v1420_v49 = vmax.f32 %v1065_v21, 0.0  ;;  %1700 = vmatpush.msrb.mxu1 %v1569_v24  ;;  %v1605_v24 = vld [vmem:[#allocation10 + $0x258] sm:$0xff] }
 0x160   :  { %1394 = vmatmul.f32.gmra.mxu3 %v2922_v3  ;;  %v3397_v41 = vpop.f32.mrf.mxu2  ;;  %v1070_v14 = vpop.f32.mrf.mxu1  ;;  %v1567_v3 = vld [vmem:[#allocation10 + $0x128] sm:$0xff] }
 0x161   :  { %1701 = vmatpush.msrb.mxu1 %v1568_v45  ;;  %1736 = vmatpush.msrb.mxu3 %v1590_v58 }
 0x162   :  { %v3400_v18 = vpop.f32.mrf.mxu3 }
 0x163   :  { %1632 = vmatmul.f32.gmra.mxu0 %v1420_v49  ;;  %v1026_v29 = vpop.f32.mrf.mxu0  ;;  %1702 = vmatpush.msrb.mxu1 %v1567_v3  ;;  %v1586_v49 = vld [vmem:[#allocation10 + $0x1c0] sm:$0xff] }
 0x164   :  { %1353 = vmatmul.f32.gmra.mxu1 %v3177_v50  ;;  %v3438_v53 = vpop.permute.xlu2 %997 }
 0x165   :  { %1703 = vmatpush.msrb.mxu1 %v1566_v12 }
 0x167   :  { %1321 = vmatmul.f32.gmra.mxu2 %v3238_v22  ;;  %1704 = vmatpush.msrb.mxu1 %v1565_v8 }
 0x168   :  { %1397 = vmatmul.f32.gmra.mxu3 %v3063_v57  ;;  %v1073_v28 = vpop.f32.mrf.mxu1 }
 0x169   :  { %1705 = vmatpush.msrb.mxu1 %v1564_v13 }
 0x16a   :  { %v3403_v50 = vpop.permute.xlu1 %977  ;;  %v3418_v19 = vpop.permute.xlu0 %987 }
 0x16b   :  { %v1027_v15 = vadd.f32 %v1026_v29, %v3403_v50  ;;  %v3410_v57 = vpop.f32.mrf.mxu2  ;;  %1706 = vmatpush.msrb.mxu1 %v1563_v26  ;;  %v1033_v25 = vadd.f32 %v3386_v20, %v3418_v19  ;;  %v1607_v20 = vld [vmem:[#allocation10 + $0x268] sm:$0xff] }
 0x16c   :  { %1356 = vmatmul.f32.gmra.mxu1 %v3607_v51  ;;  %v1030_v51 = vadd.f32 %v3376_v59, %v3407_v37  ;;  %v1608_v59 = vld [vmem:[#allocation10 + $0x270] sm:$0xff]  ;;  %v1039_v45 = vadd.f32 %v3410_v57, %v3438_v53  ;;  %v1603_v57 = vld [vmem:[#allocation10 + $0x248] sm:$0xff] }
 0x16d   :  { %v1068_v60 = vadd.f32 %v1067_v23, %v1027_v15  ;;  %1707 = vmatpush.msrb.mxu1 %v1562_v55  ;;  %v1074_v17 = vadd.f32 %v1073_v28, %v1033_v25  ;;  %v1589_v23 = vld [vmem:[#allocation10 + $0x1d8] sm:$0xff]  ;;  %v1602_v28 = vld [vmem:[#allocation10 + $0x240] sm:$0xff] }
 0x16e   :  { %v3415_v35 = vpop.f32.mrf.mxu3  ;;  %v1071_v54 = vadd.f32 %v1070_v14, %v1030_v51  ;;  %1737 = vmatpush.msrb.mxu3 %v1589_v23  ;;  %v1582_v25 = vld [vmem:[#allocation10 + $0x1a0] sm:$0xff] }
 0x16f   :  { %1324 = vmatmul.f32.gmra.mxu2 %v3286_v46  ;;  %v1425_v63 = vmax.f32 %v1068_v60, 0.0  ;;  %v1435_v9 = vmax.f32 %v1074_v17, 0.0 }
 0x170   :  { %1400 = vmatmul.f32.gmra.mxu3 %v3192_v5  ;;  %v1609_v5 = vld [vmem:[#allocation10 + $0x278] sm:$0xff]  ;;  %v1430_v56 = vmax.f32 %v1071_v54, 0.0 }
 0x171   :  { %1635 = vmatmul.f32.gmra.mxu0 %v1425_v63  ;;  %1738 = vmatpush.msrb.mxu3 %v1588_v38  ;;  %v1584_v63 = vld [vmem:[#allocation10 + $0x1b0] sm:$0xff] }
 0x172   :  { %1774 = vmatpush.msrb.mxu0 %v1609_v5  ;;  %v3428_v2 = vpop.permute.xlu1 %992 }
 0x173   :  { %v1036_v34 = vadd.f32 %v3397_v41, %v3428_v2  ;;  %1739 = vmatpush.msrb.mxu3 %v1587_v32 }
 0x174   :  { %1359 = vmatmul.f32.gmra.mxu1 %v2908_v62  ;;  %1775 = vmatpush.msrb.mxu0 %v1608_v59  ;;  %v1601_v59 = vld [vmem:[#allocation10 + $0x238] sm:$0xff] }
 0x175   :  { %1740 = vmatpush.msrb.mxu3 %v1586_v49 }
 0x176   :  { %1776 = vmatpush.msrb.mxu0 %v1607_v20  ;;  %v1580_v20 = vld [vmem:[#allocation10 + $0x190] sm:$0xff] }
 0x177   :  { %v1076_v30 = vpop.f32.mrf.mxu1  ;;  %1741 = vmatpush.msrb.mxu3 %v1585_v44  ;;  %v1594_v44 = vld [vmem:[#allocation10 + $0x200] sm:$0xff] }
 0x178   :  { %1403 = vmatmul.f32.gmra.mxu3 %v3238_v22  ;;  %v1099_v61 = vpop.f32.mrf.mxu2  ;;  %1777 = vmatpush.msrb.mxu0 %v1606_v48 }
 0x179   :  { %1638 = vmatmul.f32.gmra.mxu0 %v1430_v56  ;;  %v1100_v62 = vadd.f32 %v1099_v61, %v3371_v36  ;;  %v3424_v6 = vpop.f32.mrf.mxu3  ;;  %1742 = vmatpush.msrb.mxu3 %v1584_v63  ;;  %v1583_v56 = vld [vmem:[#allocation10 + $0x1a8] sm:$0xff] }
 0x17a   :  { %1778 = vmatpush.msrb.mxu0 %v1605_v24 }
 0x17b   :  { %v1141_v16 = vadd.f32 %v3363_v39, %v1100_v62  ;;  %1743 = vmatpush.msrb.mxu3 %v1583_v56  ;;  %v1581_v62 = vld [vmem:[#allocation10 + $0x198] sm:$0xff] }
 0x17c   :  { %1362 = vmatmul.f32.gmra.mxu1 %v3054_v0  ;;  %v1077_v0 = vadd.f32 %v1076_v30, %v1036_v34  ;;  %1779 = vmatpush.msrb.mxu0 %v1604_v31  ;;  %v1600_v30 = vld [vmem:[#allocation10 + $0x230] sm:$0xff]  ;;  %v1599_v34 = vld [vmem:[#allocation10 + $0x228] sm:$0xff]  ;;  %v1597_v31 = vld [vmem:[#allocation10 + $0x218] sm:$0xff] }
 0x17d   :  { %v1411_v22 = vmax.f32 %v1141_v16, 0.0  ;;  %1744 = vmatpush.msrb.mxu3 %v1582_v25 }
 0x17e   :  { %v1440_v21 = vmax.f32 %v1077_v0, 0.0  ;;  %1780 = vmatpush.msrb.mxu0 %v1603_v57  ;;  %v1598_v0 = vld [vmem:[#allocation10 + $0x220] sm:$0xff] }
 0x17f   :  { %1667 = vmatmul.f32.vlgmr.msrb.gmra.mxu2 %v1411_v22  ;;  %1745 = vmatpush.msrb.mxu3 %v1581_v62 }
 0x180   :  { %1406 = vmatmul.f32.gmra.mxu3 %v3286_v46  ;;  %1781 = vmatpush.msrb.mxu0 %v1602_v28 }
 0x181   :  { %v1079_v27 = vpop.f32.mrf.mxu1  ;;  %1641 = vmatmul.f32.gmra.mxu0 %v1435_v9  ;;  %v1102_v39 = vpop.f32.mrf.mxu2  ;;  %1746 = vmatpush.msrb.mxu3 %v1580_v20 }
 0x182   :  { %v1103_v1 = vadd.f32 %v1102_v39, %v3382_v33  ;;  %v3434_v42 = vpop.f32.mrf.mxu3  ;;  %1782 = vmatpush.msrb.mxu0 %v1601_v59  ;;  %v1578_v39 = vld [vmem:[#allocation10 + $0x180] sm:$0xff] }
 0x184   :  { %1365 = vmatmul.f32.gmra.mxu1 %v3179_v43  ;;  %v1144_v46 = vadd.f32 %v3368_v7, %v1103_v1  ;;  %v1080_v7 = vadd.f32 %v1079_v27, %v1039_v45  ;;  %1783 = vmatpush.msrb.mxu0 %v1600_v30  ;;  %v1579_v27 = vld [vmem:[#allocation10 + $0x188] sm:$0xff] }
 0x185   :  { %1747 = vmatpush.msrb.mxu3 %v1579_v27 }
 0x186   :  { %v1416_v40 = vmax.f32 %v1144_v46, 0.0  ;;  %v1445_v13 = vmax.f32 %v1080_v7, 0.0  ;;  %1784 = vmatpush.msrb.mxu0 %v1599_v34 }
 0x187   :  { %1748 = vmatpush.msrb.mxu3 %v1578_v39 }
 0x188   :  { %1670 = vmatmul.f32.gmra.mxu2 %v1416_v40  ;;  %1785 = vmatpush.msrb.mxu0 %v1598_v0 }
 0x189   :  { %v1181_v41 = vpop.f32.mrf.mxu1  ;;  %1644 = vmatmul.f32.gmra.mxu0 %v1440_v21 }
 0x18a   :  { %v1182_v43 = vadd.f32 %v1181_v41, %v3371_v36  ;;  %v1105_v14 = vpop.f32.mrf.mxu2  ;;  %1786 = vmatpush.msrb.mxu0 %v1597_v31  ;;  %v1596_v41 = vld [vmem:[#allocation10 + $0x210] sm:$0xff] }
 0x18b   :  { %v1106_v3 = vadd.f32 %v1105_v14, %v3391_v52  ;;  %v1222_v12 = vpop.f32.mrf.mxu3 }
 0x18c   :  { %v1223_v29 = vadd.f32 %v1222_v12, %v1182_v43  ;;  %v1263_v43 = vpop.f32.mrf.mxu0  ;;  %1787 = vmatpush.msrb.mxu0 %v1596_v41 }
 0x18d   :  { %v1147_v8 = vadd.f32 %v3378_v4, %v1106_v3 }
 0x18e   :  { %v1412_v15 = vmax.f32 %v1223_v29, 0.0 }
 0x18f   :  { %v1421_v60 = vmax.f32 %v1147_v8, 0.0 }
 0x190   :  { %1708 = vmatmul.f32.vlgmr.msrb.gmra.mxu1 %v1412_v15 }
 0x191   :  { %v1184_v26 = vpop.f32.mrf.mxu1  ;;  %1673 = vmatmul.f32.gmra.mxu2 %v1421_v60  ;;  %1647 = vmatmul.f32.gmra.mxu0 %v1445_v13  ;;  %v1595_v60 = vld [vmem:[#allocation10 + $0x208] sm:$0xff] }
 0x192   :  { %v1185_v10 = vadd.f32 %v1184_v26, %v3382_v33  ;;  %v1108_v51 = vpop.f32.mrf.mxu2  ;;  %1788 = vmatpush.msrb.mxu0 %v1595_v60 }
 0x193   :  { %v1109_v55 = vadd.f32 %v1108_v51, %v3403_v50  ;;  %v1225_v4 = vpop.f32.mrf.mxu3 }
 0x194   :  { %v1226_v54 = vadd.f32 %v1225_v4, %v1185_v10  ;;  %1789 = vmatpush.msrb.mxu0 %v1594_v44  ;;  %v1266_v63 = vpop.f32.mrf.mxu0 }
 0x195   :  { %v1150_v47 = vadd.f32 %v3389_v11, %v1109_v55 }
 0x196   :  { %v1417_v5 = vmax.f32 %v1226_v54, 0.0 }
 0x197   :  { %v1426_v58 = vmax.f32 %v1150_v47, 0.0  ;;  %v1264_v47 = vadd.f32 %v1263_v43, %v3371_v36 }
 0x198   :  { %1711 = vmatmul.f32.gmra.mxu1 %v1417_v5 }
 0x199   :  { %v1187_v61 = vpop.f32.mrf.mxu1  ;;  %1676 = vmatmul.f32.gmra.mxu2 %v1426_v58 }
 0x19a   :  { %v1188_v17 = vadd.f32 %v1187_v61, %v3391_v52  ;;  %v1111_v16 = vpop.f32.mrf.mxu2 }
 0x19b   :  { %v1112_v22 = vadd.f32 %v1111_v16, %v3407_v37  ;;  %v1228_v9 = vpop.f32.mrf.mxu3 }
 0x19c   :  { %v1229_v11 = vadd.f32 %v1228_v9, %v1188_v17  ;;  %v1269_v30 = vpop.f32.mrf.mxu0 }
 0x19d   :  { %v1153_v23 = vadd.f32 %v3400_v18, %v1112_v22 }
 0x19e   :  { %v1422_v38 = vmax.f32 %v1229_v11, 0.0 }
 0x19f   :  { %v1431_v48 = vmax.f32 %v1153_v23, 0.0 }
 0x1a0   :  { %1714 = vmatmul.f32.gmra.mxu1 %v1422_v38 }
 0x1a1   :  { %v1190_v1 = vpop.f32.mrf.mxu1  ;;  %1679 = vmatmul.f32.gmra.mxu2 %v1431_v48  ;;  %v1270_v48 = vadd.f32 %v1269_v30, %v3391_v52 }
 0x1a2   :  { %v1191_v46 = vadd.f32 %v1190_v1, %v3403_v50  ;;  %v1114_v40 = vpop.f32.mrf.mxu2 }
 0x1a3   :  { %v1115_v18 = vadd.f32 %v1114_v40, %v3418_v19  ;;  %v1231_v21 = vpop.f32.mrf.mxu3 }
 0x1a4   :  { %v1232_v32 = vadd.f32 %v1231_v21, %v1191_v46  ;;  %v1272_v34 = vpop.f32.mrf.mxu0 }
 0x1a5   :  { %v1156_v24 = vadd.f32 %v3415_v35, %v1115_v18 }
 0x1a6   :  { %v1427_v49 = vmax.f32 %v1232_v32, 0.0 }
 0x1a7   :  { %v1436_v45 = vmax.f32 %v1156_v24, 0.0 }
 0x1a8   :  { %1717 = vmatmul.f32.gmra.mxu1 %v1427_v49  ;;  %v1273_v49 = vadd.f32 %v1272_v34, %v3403_v50 }
 0x1a9   :  { %v1193_v14 = vpop.f32.mrf.mxu1  ;;  %1682 = vmatmul.f32.gmra.mxu2 %v1436_v45 }
 0x1aa   :  { %v1194_v7 = vadd.f32 %v1193_v14, %v3407_v37  ;;  %v1117_v3 = vpop.f32.mrf.mxu2 }
 0x1ab   :  { %v1118_v12 = vadd.f32 %v1117_v3, %v3428_v2  ;;  %v1234_v29 = vpop.f32.mrf.mxu3 }
 0x1ac   :  { %v1235_v8 = vadd.f32 %v1234_v29, %v1194_v7  ;;  %v1275_v24 = vpop.f32.mrf.mxu0 }
 0x1ad   :  { %v1159_v15 = vadd.f32 %v3424_v6, %v1118_v12  ;;  %v1276_v12 = vadd.f32 %v1275_v24, %v3407_v37 }
 0x1ae   :  { %v1432_v35 = vmax.f32 %v1235_v8, 0.0 }
 0x1af   :  { %v1441_v13 = vmax.f32 %v1159_v15, 0.0 }
 0x1b0   :  { %1720 = vmatmul.f32.gmra.mxu1 %v1432_v35 }
 0x1b1   :  { %v1196_v57 = vpop.f32.mrf.mxu1  ;;  %1685 = vmatmul.f32.gmra.mxu2 %v1441_v13 }
 0x1b2   :  { %v1197_v26 = vadd.f32 %v1196_v57, %v3418_v19  ;;  %v1120_v28 = vpop.f32.mrf.mxu2 }
 0x1b3   :  { %v1121_v10 = vadd.f32 %v1120_v28, %v3438_v53  ;;  %v1237_v51 = vpop.f32.mrf.mxu3 }
 0x1b4   :  { %v1238_v55 = vadd.f32 %v1237_v51, %v1197_v26  ;;  %v1278_v8 = vpop.f32.mrf.mxu0 }
 0x1b5   :  { %v1162_v4 = vadd.f32 %v3434_v42, %v1121_v10  ;;  %v1267_v42 = vadd.f32 %v1266_v63, %v3382_v33  ;;  %v1279_v63 = vadd.f32 %v1278_v8, %v3418_v19 }
 0x1b6   :  { %v1437_v6 = vmax.f32 %v1238_v55, 0.0 }
 0x1b7   :  { %v1446_v54 = vmax.f32 %v1162_v4, 0.0 }
 0x1b8   :  { %1723 = vmatmul.f32.gmra.mxu1 %v1437_v6 }
 0x1b9   :  { %v1199_v5 = vpop.f32.mrf.mxu1  ;;  %1688 = vmatmul.f32.gmra.mxu2 %v1446_v54 }
 0x1ba   :  { %v1200_v58 = vadd.f32 %v1199_v5, %v3428_v2  ;;  %v1304_v56 = vpop.f32.mrf.mxu2 }
 0x1bb   :  { %v1305_v59 = vadd.f32 %v1304_v56, %v1264_v47  ;;  %v1240_v25 = vpop.f32.mrf.mxu3 }
 0x1bc   :  { %v1241_v61 = vadd.f32 %v1240_v25, %v1200_v58  ;;  %v1281_v4 = vpop.f32.mrf.mxu0 }
 0x1bd   :  { %v1413_v62 = vmax.f32 %v1305_v59, 0.0  ;;  %v1282_v47 = vadd.f32 %v1281_v4, %v3428_v2 }
 0x1be   :  { %v1442_v17 = vmax.f32 %v1241_v61, 0.0 }
 0x1bf   :  { %1749 = vmatmul.f32.vlgmr.msrb.gmra.mxu3 %v1413_v62 }
 0x1c0   :  { %1726 = vmatmul.f32.gmra.mxu1 %v1442_v17 }
 0x1c1   :  { %v1202_v16 = vpop.f32.mrf.mxu1 }
 0x1c2   :  { %v1203_v22 = vadd.f32 %v1202_v16, %v3438_v53  ;;  %v1307_v9 = vpop.f32.mrf.mxu2 }
 0x1c3   :  { %v1308_v11 = vadd.f32 %v1307_v9, %v1267_v42  ;;  %v1243_v23 = vpop.f32.mrf.mxu3 }
 0x1c4   :  { %v1244_v20 = vadd.f32 %v1243_v23, %v1203_v22 }
 0x1c5   :  { %v1418_v38 = vmax.f32 %v1308_v11, 0.0 }
 0x1c6   :  { %v1447_v27 = vmax.f32 %v1244_v20, 0.0 }
 0x1c7   :  { %1752 = vmatmul.f32.gmra.mxu3 %v1418_v38 }
 0x1c8   :  { %1729 = vmatmul.f32.gmra.mxu1 %v1447_v27 }
 0x1c9   :  { %v1345_v39 = vpop.f32.mrf.mxu1 }
 0x1ca   :  { %v1346_v0 = vadd.f32 %v1345_v39, %v3371_v36  ;;  %v1310_v1 = vpop.f32.mrf.mxu2 }
 0x1cb   :  { %v1311_v46 = vadd.f32 %v1310_v1, %v1270_v48  ;;  %v1386_v40 = vpop.f32.mrf.mxu3 }
 0x1cc   :  { %v1387_v18 = vadd.f32 %v1386_v40, %v1346_v0 }
 0x1cd   :  { %v1423_v21 = vmax.f32 %v1311_v46, 0.0 }
 0x1ce   :  { %v1414_v32 = vmax.f32 %v1387_v18, 0.0 }
 0x1cf   :  { %1755 = vmatmul.f32.gmra.mxu3 %v1423_v21 }
 0x1d0   :  { %1790 = vmatmul.f32.vlgmr.msrb.gmra.mxu0 %v1414_v32 }
 0x1d1   :  { %v1348_v31 = vpop.f32.mrf.mxu1 }
 0x1d2   :  { %v1349_v45 = vadd.f32 %v1348_v31, %v3382_v33  ;;  %v1313_v41 = vpop.f32.mrf.mxu2 }
 0x1d3   :  { %v1314_v43 = vadd.f32 %v1313_v41, %v1273_v49  ;;  %v1389_v14 = vpop.f32.mrf.mxu3 }
 0x1d4   :  { %v1390_v7 = vadd.f32 %v1389_v14, %v1349_v45 }
 0x1d5   :  { %v1428_v3 = vmax.f32 %v1314_v43, 0.0 }
 0x1d6   :  { %v1419_v36 = vmax.f32 %v1390_v7, 0.0 }
 0x1d7   :  { %1758 = vmatmul.f32.gmra.mxu3 %v1428_v3 }
 0x1d8   :  { %1793 = vmatmul.f32.gmra.mxu0 %v1419_v36 }
 0x1d9   :  { %v1351_v29 = vpop.f32.mrf.mxu1 }
 0x1da   :  { %v1352_v15 = vadd.f32 %v1351_v29, %v3391_v52  ;;  %v1316_v35 = vpop.f32.mrf.mxu2 }
 0x1db   :  { %v1317_v60 = vadd.f32 %v1316_v35, %v1276_v12  ;;  %v1392_v13 = vpop.f32.mrf.mxu3 }
 0x1dc   :  { %v1393_v44 = vadd.f32 %v1392_v13, %v1352_v15 }
 0x1dd   :  { %v1433_v57 = vmax.f32 %v1317_v60, 0.0 }
 0x1de   :  { %v1424_v33 = vmax.f32 %v1393_v44, 0.0 }
 0x1df   :  { %1761 = vmatmul.f32.gmra.mxu3 %v1433_v57 }
 0x1e0   :  { %1796 = vmatmul.f32.gmra.mxu0 %v1424_v33 }
 0x1e1   :  { %v1354_v26 = vpop.f32.mrf.mxu1 }
 0x1e2   :  { %v1355_v28 = vadd.f32 %v1354_v26, %v3403_v50  ;;  %v1319_v10 = vpop.f32.mrf.mxu2  ;;  %v1284_v50 = vpop.f32.mrf.mxu0 }
 0x1e3   :  { %v1320_v51 = vadd.f32 %v1319_v10, %v1279_v63  ;;  %v1395_v55 = vpop.f32.mrf.mxu3  ;;  %v1285_v17 = vadd.f32 %v1284_v50, %v3438_v53 }
 0x1e4   :  { %v1396_v6 = vadd.f32 %v1395_v55, %v1355_v28 }
 0x1e5   :  { %v1438_v54 = vmax.f32 %v1320_v51, 0.0 }
 0x1e6   :  { %v1429_v52 = vmax.f32 %v1396_v6, 0.0 }
 0x1e7   :  { %1764 = vmatmul.f32.gmra.mxu3 %v1438_v54 }
 0x1e8   :  { %1799 = vmatmul.f32.gmra.mxu0 %v1429_v52 }
 0x1e9   :  { %v1357_v5 = vpop.f32.mrf.mxu1 }
 0x1ea   :  { %v1358_v58 = vadd.f32 %v1357_v5, %v3407_v37  ;;  %v1322_v56 = vpop.f32.mrf.mxu2  ;;  %v1627_v0 = vpop.f32.mrf.mxu0 }
 0x1eb   :  { %v1323_v59 = vadd.f32 %v1322_v56, %v1282_v47  ;;  %v1398_v25 = vpop.f32.mrf.mxu3 }
 0x1ec   :  { %v1399_v30 = vadd.f32 %v1398_v25, %v1358_v58 }
 0x1ed   :  { %v1443_v61 = vmax.f32 %v1323_v59, 0.0 }
 0x1ee   :  { %v1434_v62 = vmax.f32 %v1399_v30, 0.0 }
 0x1ef   :  { %1767 = vmatmul.f32.gmra.mxu3 %v1443_v61 }
 0x1f0   :  { %1802 = vmatmul.f32.gmra.mxu0 %v1434_v62 }
 0x1f1   :  { %v1360_v42 = vpop.f32.mrf.mxu1 }
 0x1f2   :  { %v1361_v16 = vadd.f32 %v1360_v42, %v3418_v19  ;;  %v1325_v22 = vpop.f32.mrf.mxu2  ;;  %v1630_v21 = vpop.f32.mrf.mxu0 }
 0x1f3   :  { %v1326_v9 = vadd.f32 %v1325_v22, %v1285_v17  ;;  %v1401_v11 = vpop.f32.mrf.mxu3 }
 0x1f4   :  { %v1402_v23 = vadd.f32 %v1401_v11, %v1361_v16 }
 0x1f5   :  { %v1448_v20 = vmax.f32 %v1326_v9, 0.0 }
 0x1f6   :  { %v1439_v37 = vmax.f32 %v1402_v23, 0.0 }
 0x1f7   :  { %1770 = vmatmul.f32.gmra.mxu3 %v1448_v20 }
 0x1f8   :  { %1805 = vmatmul.f32.gmra.mxu0 %v1439_v37 }
 0x1f9   :  { %v1363_v38 = vpop.f32.mrf.mxu1 }
 0x1fa   :  { %v1364_v34 = vadd.f32 %v1363_v38, %v3428_v2  ;;  %v1633_v32 = vpop.f32.mrf.mxu0 }
 0x1fb   :  { %v1404_v27 = vpop.f32.mrf.mxu3 }
 0x1fc   :  { %v1405_v48 = vadd.f32 %v1404_v27, %v1364_v34 }
 0x1fe   :  { %v1444_v39 = vmax.f32 %v1405_v48, 0.0 }
 0x200   :  { %1808 = vmatmul.f32.gmra.mxu0 %v1444_v39 }
 0x201   :  { %v1366_v1 = vpop.f32.mrf.mxu1 }
 0x202   :  { %v1367_v46 = vadd.f32 %v1366_v1, %v3438_v53  ;;  %v1636_v24 = vpop.f32.mrf.mxu0  ;;  %v1668_v45 = vpop.f32.mrf.mxu2 }
 0x203   :  { %v1407_v19 = vpop.f32.mrf.mxu3  ;;  %v1669_v36 = vadd.f32 %v1668_v45, %v1627_v0 }
 0x204   :  { %v1408_v40 = vadd.f32 %v1407_v19, %v1367_v46 }
 0x206   :  { %v1449_v18 = vmax.f32 %v1408_v40, 0.0 }
 0x208   :  { %1811 = vmatmul.f32.gmra.mxu0 %v1449_v18 }
 0x20a   :  { %v1639_v49 = vpop.f32.mrf.mxu0 }
 0x20b   :  { %v1671_v43 = vpop.f32.mrf.mxu2 }
 0x20c   :  { %v1672_v13 = vadd.f32 %v1671_v43, %v1630_v21 }
 0x20d   :  { %v1709_v41 = vpop.f32.mrf.mxu1 }
 0x20e   :  { %v1710_v12 = vadd.f32 %v1709_v41, %v1669_v36 }
 0x212   :  { %v1642_v31 = vpop.f32.mrf.mxu0 }
 0x214   :  { %v1674_v53 = vpop.f32.mrf.mxu2 }
 0x215   :  { %v1712_v7 = vpop.f32.mrf.mxu1  ;;  %v1675_v51 = vadd.f32 %v1674_v53, %v1633_v32 }
 0x216   :  { %v1713_v44 = vadd.f32 %v1712_v7, %v1672_v13 }
 0x21a   :  { %v1645_v2 = vpop.f32.mrf.mxu0 }
 0x21c   :  { %v1677_v63 = vpop.f32.mrf.mxu2 }
 0x21d   :  { %v1715_v15 = vpop.f32.mrf.mxu1  ;;  %v1678_v5 = vadd.f32 %v1677_v63, %v1636_v24 }
 0x21e   :  { %v1716_v55 = vadd.f32 %v1715_v15, %v1675_v51 }
 0x222   :  { %v1648_v3 = vpop.f32.mrf.mxu0 }
 0x224   :  { %v1680_v47 = vpop.f32.mrf.mxu2 }
 0x225   :  { %v1718_v10 = vpop.f32.mrf.mxu1  ;;  %v1681_v50 = vadd.f32 %v1680_v47, %v1639_v49 }
 0x226   :  { %v1719_v56 = vadd.f32 %v1718_v10, %v1678_v5 }
 0x22c   :  { %v1683_v62 = vpop.f32.mrf.mxu2 }
 0x22d   :  { %v1721_v58 = vpop.f32.mrf.mxu1  ;;  %v1684_v23 = vadd.f32 %v1683_v62, %v1642_v31 }
 0x22e   :  { %v1722_v17 = vadd.f32 %v1721_v58, %v1681_v50 }
 0x234   :  { %v1686_v37 = vpop.f32.mrf.mxu2 }
 0x235   :  { %v1724_v42 = vpop.f32.mrf.mxu1  ;;  %v1687_v0 = vadd.f32 %v1686_v37, %v1645_v2 }
 0x236   :  { %v1725_v20 = vadd.f32 %v1724_v42, %v1684_v23 }
 0x23c   :  { %v1689_v19 = vpop.f32.mrf.mxu2 }
 0x23d   :  { %v1727_v34 = vpop.f32.mrf.mxu1  ;;  %v1690_v32 = vadd.f32 %v1689_v19, %v1648_v3 }
 0x23e   :  { %v1728_v1 = vadd.f32 %v1727_v34, %v1687_v0 }
 0x242   :  { %v1750_v14 = vpop.f32.mrf.mxu3 }
 0x243   :  { %v1751_v8 = vadd.f32 %v1750_v14, %v1710_v12 }
 0x245   :  { %v1730_v21 = vpop.f32.mrf.mxu1 }
 0x246   :  { %v1731_v49 = vadd.f32 %v1730_v21, %v1690_v32 }
 0x24a   :  { %v1753_v29 = vpop.f32.mrf.mxu3 }
 0x24b   :  { %v1754_v33 = vadd.f32 %v1753_v29, %v1713_v44 }
 0x24d   :  { %v1791_v35 = vpop.f32.mrf.mxu0 }
 0x24e   :  { %v1792_v60 = vadd.f32 %v1791_v35, %v1751_v8 }
 0x250   :  { %1815 = vst [vmem:[#allocation11] sm:$0xff] %v1792_v60 }
 0x252   :  { %v1756_v57 = vpop.f32.mrf.mxu3 }
 0x253   :  { %v1757_v6 = vadd.f32 %v1756_v57, %v1716_v55 }
 0x255   :  { %v1794_v26 = vpop.f32.mrf.mxu0 }
 0x256   :  { %v1795_v28 = vadd.f32 %v1794_v26, %v1754_v33 }
 0x258   :  { %1816 = vst [vmem:[#allocation11 + $0x8] sm:$0xff] %v1795_v28 }
 0x25a   :  { %v1759_v4 = vpop.f32.mrf.mxu3 }
 0x25b   :  { %v1760_v25 = vadd.f32 %v1759_v4, %v1719_v56 }
 0x25d   :  { %v1797_v54 = vpop.f32.mrf.mxu0 }
 0x25e   :  { %v1798_v52 = vadd.f32 %v1797_v54, %v1757_v6 }
 0x260   :  { %1817 = vst [vmem:[#allocation11 + $0x10] sm:$0xff] %v1798_v52 }
 0x262   :  { %v1762_v59 = vpop.f32.mrf.mxu3 }
 0x263   :  { %v1763_v16 = vadd.f32 %v1762_v59, %v1722_v17 }
 0x265   :  { %v1800_v30 = vpop.f32.mrf.mxu0 }
 0x266   :  { %v1801_v61 = vadd.f32 %v1800_v30, %v1760_v25 }
 0x268   :  { %1818 = vst [vmem:[#allocation11 + $0x18] sm:$0xff] %v1801_v61 }
 0x26a   :  { %v1765_v22 = vpop.f32.mrf.mxu3 }
 0x26b   :  { %v1766_v38 = vadd.f32 %v1765_v22, %v1725_v20 }
 0x26d   :  { %v1803_v9 = vpop.f32.mrf.mxu0 }
 0x26e   :  { %v1804_v11 = vadd.f32 %v1803_v9, %v1763_v16 }
 0x270   :  { %1819 = vst [vmem:[#allocation11 + $0x20] sm:$0xff] %v1804_v11 }
 0x272   :  { %v1768_v39 = vpop.f32.mrf.mxu3 }
 0x273   :  { %v1769_v46 = vadd.f32 %v1768_v39, %v1728_v1 }
 0x275   :  { %v1806_v27 = vpop.f32.mrf.mxu0 }
 0x276   :  { %v1807_v48 = vadd.f32 %v1806_v27, %v1766_v38 }
 0x278   :  { %1820 = vst [vmem:[#allocation11 + $0x28] sm:$0xff] %v1807_v48 }
 0x27a   :  { %v1771_v24 = vpop.f32.mrf.mxu3 }
 0x27b   :  { %v1772_v31 = vadd.f32 %v1771_v24, %v1731_v49 }
 0x27d   :  { %v1809_v40 = vpop.f32.mrf.mxu0 }
 0x27e   :  { %v1810_v18 = vadd.f32 %v1809_v40, %v1769_v46 }
 0x280   :  { %1821 = vst [vmem:[#allocation11 + $0x30] sm:$0xff] %v1810_v18 }
 0x285   :  { %v1812_v45 = vpop.f32.mrf.mxu0 }
 0x286   :  { %v1813_v41 = vadd.f32 %v1812_v45, %v1772_v31 }
 0x288   :  { %1822 = vst [vmem:[#allocation11 + $0x38] sm:$0xff] %v1813_v41 }
 0x289   :  { %1835 = dma.vmem_to_hbm [thread:$0]  %s1828_s25, 1024, %s1830_s28, [#allocation7], %s2145_s7, %s2145_s7, %s2146_s0  }
 0x28a   :  { %2136 = dma.done.wait [#allocation7], 1024  }
 0x28b   :  { %2137 = vsyncadd [#allocation7], 4294966272 }
 0x28c   :  { %1840 = vsyncpa [#allocation6], 1 }
 0x28d   :  { %1841 = vsyncpa [#allocation9], 1 }
 0x28e   :  { %1842 = vsyncpa [#allocation7], 1 }

</bundles_post_ra>
